<compile_context>
chip_gen: v5e
topology: v5e:2x2
jax: 0.10.0
libtpu: 0.0.40
codegen_flags: <defaults>
</compile_context>

<pallas_src>
import functools

import jax
import jax.numpy as jnp
from jax.experimental import pallas as pl
from jax.experimental.pallas import tpu as pltpu


_DIMS = [784, 512, 256, 128, 64, 10]
_H4_PAD = 128   # layer-4 output (64) zero-padded to a full lane width
_OUT_PAD = 128  # layer-5 output (10) zero-padded to a full lane width


def _cdiv(a, b):
    return -(-a // b)


def _round_up(x, m):
    return _cdiv(x, m) * m


def _mlp_kernel(x_ref,
                w1_ref, b1_ref,
                w2_ref, b2_ref,
                w3_ref, b3_ref,
                w4_ref, b4_ref,
                w5_ref, b5_ref,
                o_ref):
    # x_ref: (BM, 784) f32 tile of the batch.  The bf16 cast happens HERE (VPU
    # work hidden under the MXU) instead of as a standalone XLA op in the
    # wrapper.  Weights are bf16 (in, out), biases f32 (1, out); every dot
    # accumulates in f32 on the MXU.
    h = x_ref[...].astype(jnp.bfloat16)

    h = jnp.dot(h, w1_ref[...], preferred_element_type=jnp.float32) + b1_ref[...]
    h = jnp.maximum(h, 0.0).astype(jnp.bfloat16)

    h = jnp.dot(h, w2_ref[...], preferred_element_type=jnp.float32) + b2_ref[...]
    h = jnp.maximum(h, 0.0).astype(jnp.bfloat16)

    h = jnp.dot(h, w3_ref[...], preferred_element_type=jnp.float32) + b3_ref[...]
    h = jnp.maximum(h, 0.0).astype(jnp.bfloat16)

    # Layer 4: output zero-padded 64 -> 128 lanes (full-width MXU pass).
    h = jnp.dot(h, w4_ref[...], preferred_element_type=jnp.float32) + b4_ref[...]
    h = jnp.maximum(h, 0.0).astype(jnp.bfloat16)

    # Final layer: no activation; output lanes padded to 128 -> lane-dense store.
    o_ref[...] = (jnp.dot(h, w5_ref[...], preferred_element_type=jnp.float32)
                  + b5_ref[...])


def prepare_params(params):
    """One-time prep (OUTSIDE the per-call forward path):
      * transpose torch-style (out, in) weights to (in, out) and cast to bf16,
      * zero-pad layer 4's 64 output features to 128 (and b4 to 128),
      * zero-pad layer 5's input rows 64 -> 128 and outputs 10 -> 128.
    Zero padding is numerically exact: ReLU(0 + 0) = 0 and zero weight
    rows/columns contribute nothing to the dots."""
    ops = []
    for i in range(1, 6):
        w = params[f"w{i}"].astype(jnp.float32).T          # (in, out)
        b = params[f"b{i}"].astype(jnp.float32)            # (out,)
        if i == 4:
            w = jnp.pad(w, ((0, 0), (0, _H4_PAD - w.shape[1])))
            b = jnp.pad(b, (0, _H4_PAD - b.shape[0]))
        elif i == 5:
            w = jnp.pad(w, ((0, _H4_PAD - w.shape[0]),
                            (0, _OUT_PAD - w.shape[1])))
            b = jnp.pad(b, (0, _OUT_PAD - b.shape[0]))
        ops.append(w.astype(jnp.bfloat16))
        ops.append(b.reshape(1, -1))
    return tuple(ops)


def _choose_bm(batch, block_m):
    """Pick the batch-tile size.

    Small batches (< 1024 rows): a single latency-bound tile, rows rounded up
    to the f32 sublane count (8), so there is no dead per-step overhead.
    Large batches: balanced tiles that are multiples of 256 (MXU-friendly on
    v6e/v7x, also a multiple of v5e's 128) with >= 2 grid steps, so the
    "parallel" batch axis shards across both v7x TensorCores and batch padding
    never exceeds one tile."""
    block_m = max(256, _round_up(block_m, 256))
    if batch < 1024:
        return _round_up(batch, 8)
    n_blocks = max(2, _cdiv(batch, block_m))
    return min(block_m, _round_up(_cdiv(batch, n_blocks), 256))


@functools.partial(jax.jit, static_argnames=("block_m", "single_buffer_weights"))
def net_forward(x, prepared, block_m=1024, single_buffer_weights=False):
    """Forward pass of Net.

    x: any shape whose trailing dims flatten to 784 (e.g. (B, 1, 28, 28)),
       any float dtype (cast to bf16 inside the kernel).
    prepared: output of prepare_params() (bf16 (in,out) weights, f32 biases).
    """
    x2d = x.reshape(-1, 784)
    batch = x2d.shape[0]

    bm = _choose_bm(batch, block_m)
    b_pad = _round_up(batch, bm)
    if b_pad != batch:
        x2d = jnp.pad(x2d, ((0, b_pad - batch), (0, 0)))

    grid = (b_pad // bm,)

    # Streamed batch tile; weights/biases are fully VMEM-resident blocks
    # (constant index_map -> fetched once, not re-DMA'd per grid step).
    in_specs = [pl.BlockSpec((bm, 784), lambda i: (i, 0))]
    # Review item: pl.Buffered(1) skips double-buffering the never-changing
    # weight blocks, freeing ~1.2 MiB of VMEM.  Off by default: the default
    # pipeline already fits comfortably in the 32 MiB scoped limit.
    weight_kwargs = (
        {"pipeline_mode": pl.Buffered(1)} if single_buffer_weights else {})
    for op in prepared:
        shape = tuple(op.shape)  # captured eagerly; index_map has no free vars
        in_specs.append(pl.BlockSpec(shape, lambda i: (0, 0), **weight_kwargs))
    out_spec = pl.BlockSpec((bm, _OUT_PAD), lambda i: (i, 0))

    # Advisory cost estimate (counts the actual padded MXU work performed).
    flops = 2 * b_pad * (784 * 512 + 512 * 256 + 256 * 128
                         + 128 * _H4_PAD + _H4_PAD * _OUT_PAD)
    bytes_accessed = (int(x2d.size) * x2d.dtype.itemsize
                      + sum(int(op.size) * op.dtype.itemsize for op in prepared)
                      + b_pad * _OUT_PAD * 4)

    out = pl.pallas_call(
        _mlp_kernel,
        out_shape=jax.ShapeDtypeStruct((b_pad, _OUT_PAD), jnp.float32),
        grid=grid,
        in_specs=in_specs,
        out_specs=out_spec,
        compiler_params=pltpu.CompilerParams(
            dimension_semantics=("parallel",),
            vmem_limit_bytes=32 << 20),
        cost_estimate=pl.CostEstimate(
            flops=flops, transcendentals=0, bytes_accessed=bytes_accessed),
    )(x2d, *prepared)

    return out[:batch, :10]


def init_params(key):
    """Deterministic init mimicking torch.nn.Linear default
    (U(-1/sqrt(fan_in), 1/sqrt(fan_in)))."""
    params = {}
    for i in range(5):
        fan_in, fan_out = _DIMS[i], _DIMS[i + 1]
        key, kw, kb = jax.random.split(key, 3)
        bound = 1.0 / jnp.sqrt(fan_in)
        params[f"w{i + 1}"] = jax.random.uniform(
            kw, (fan_out, fan_in), jnp.float32, -bound, bound)
        params[f"b{i + 1}"] = jax.random.uniform(
            kb, (fan_out,), jnp.float32, -bound, bound)
    return params


def _reference_forward(x, params):
    """Plain-JAX reference mimicking the kernel's bf16/f32-accumulation
    numerics (intentional inference-time approximation of the f32 module)."""
    h = x.reshape(-1, 784).astype(jnp.bfloat16)
    for i in range(1, 5):
        w = params[f"w{i}"].T.astype(jnp.bfloat16)
        b = params[f"b{i}"].astype(jnp.float32)
        h = jnp.dot(h, w, preferred_element_type=jnp.float32) + b
        h = jnp.maximum(h, 0.0).astype(jnp.bfloat16)
    w = params["w5"].T.astype(jnp.bfloat16)
    b = params["b5"].astype(jnp.float32)
    return jnp.dot(h, w, preferred_element_type=jnp.float32) + b


if __name__ == "__main__":
    key = jax.random.PRNGKey(0)
    key, kx = jax.random.split(key)

    # MNIST-like NCHW input: (batch=8, channels=1, 28, 28) -> flattens to 784.
    x = jax.random.normal(kx, (8, 1, 28, 28), jnp.float32)
    params = init_params(key)
    prepared = prepare_params(params)

    out = net_forward(x, prepared)
    out = jax.block_until_ready(out)

    ref = _reference_forward(x, params)
    assert out.shape == (8, 10), out.shape
    assert jnp.allclose(out, ref, atol=2e-2, rtol=2e-2), "mismatch vs reference"

    print("KERNEL_OK")
</pallas_src>

<mosaic_0001>
module attributes {stable_mosaic.version = 11 : i64} {
  func.func @_mlp_kernel(%arg0: i32, %arg1: memref<8x784xf32, #tpu.memory_space<vmem>>, %arg2: memref<784x512xbf16, #tpu.memory_space<vmem>>, %arg3: memref<1x512xf32, #tpu.memory_space<vmem>>, %arg4: memref<512x256xbf16, #tpu.memory_space<vmem>>, %arg5: memref<1x256xf32, #tpu.memory_space<vmem>>, %arg6: memref<256x128xbf16, #tpu.memory_space<vmem>>, %arg7: memref<1x128xf32, #tpu.memory_space<vmem>>, %arg8: memref<128x128xbf16, #tpu.memory_space<vmem>>, %arg9: memref<1x128xf32, #tpu.memory_space<vmem>>, %arg10: memref<128x128xbf16, #tpu.memory_space<vmem>>, %arg11: memref<1x128xf32, #tpu.memory_space<vmem>>, %arg12: memref<8x128xf32, #tpu.memory_space<vmem>>) attributes {dimension_semantics = [#tpu.dimension_semantics<parallel>], iteration_bounds = array<i64: 1>, scalar_prefetch = 0 : i64, scratch_operands = 0 : i64, tpu.core_type = #tpu.core_type<tc>, window_params = [{transform_indices = @transform_0, window_bounds = array<i64: 8, 784>}, {pipeline_mode = #tpu.pipeline_mode<synchronous>, transform_indices = @transform_1, window_bounds = array<i64: 784, 512>}, {pipeline_mode = #tpu.pipeline_mode<synchronous>, transform_indices = @transform_2, window_bounds = array<i64: 1, 512>}, {pipeline_mode = #tpu.pipeline_mode<synchronous>, transform_indices = @transform_3, window_bounds = array<i64: 512, 256>}, {pipeline_mode = #tpu.pipeline_mode<synchronous>, transform_indices = @transform_4, window_bounds = array<i64: 1, 256>}, {pipeline_mode = #tpu.pipeline_mode<synchronous>, transform_indices = @transform_5, window_bounds = array<i64: 256, 128>}, {pipeline_mode = #tpu.pipeline_mode<synchronous>, transform_indices = @transform_6, window_bounds = array<i64: 1, 128>}, {pipeline_mode = #tpu.pipeline_mode<synchronous>, transform_indices = @transform_7, window_bounds = array<i64: 128, 128>}, {pipeline_mode = #tpu.pipeline_mode<synchronous>, transform_indices = @transform_8, window_bounds = array<i64: 1, 128>}, {pipeline_mode = #tpu.pipeline_mode<synchronous>, transform_indices = @transform_9, window_bounds = array<i64: 128, 128>}, {pipeline_mode = #tpu.pipeline_mode<synchronous>, transform_indices = @transform_10, window_bounds = array<i64: 1, 128>}, {transform_indices = @transform_11, window_bounds = array<i64: 8, 128>}]} {
    %c0 = arith.constant 0 : index
    %c0_0 = arith.constant 0 : index
    %0 = vector.load %arg1[%c0, %c0_0] : memref<8x784xf32, #tpu.memory_space<vmem>>, vector<8x784xf32>
    %1 = arith.truncf %0 : vector<8x784xf32> to vector<8x784xbf16>
    %c0_1 = arith.constant 0 : index
    %c0_2 = arith.constant 0 : index
    %2 = vector.load %arg2[%c0_1, %c0_2] : memref<784x512xbf16, #tpu.memory_space<vmem>>, vector<784x512xbf16>
    %cst = arith.constant dense<0.000000e+00> : vector<8x512xf32>
    %3 = tpu.matmul %1, %2, %cst {dimension_numbers = #tpu.dot_dimension_numbers<[1], [0], [0], [1], [0, 0, 1, 1], [], []>} : vector<8x784xbf16>, vector<784x512xbf16>, vector<8x512xf32> -> vector<8x512xf32>
    %c0_3 = arith.constant 0 : index
    %c0_4 = arith.constant 0 : index
    %4 = vector.load %arg3[%c0_3, %c0_4] : memref<1x512xf32, #tpu.memory_space<vmem>>, vector<1x512xf32>
    %5 = vector.broadcast %4 : vector<1x512xf32> to vector<8x512xf32>
    %6 = arith.addf %3, %5 : vector<8x512xf32>
    %cst_5 = arith.constant 0.000000e+00 : f32
    %7 = vector.broadcast %cst_5 : f32 to vector<8x512xf32>
    %8 = arith.maximumf %6, %7 : vector<8x512xf32>
    %9 = arith.truncf %8 : vector<8x512xf32> to vector<8x512xbf16>
    %c0_6 = arith.constant 0 : index
    %c0_7 = arith.constant 0 : index
    %10 = vector.load %arg4[%c0_6, %c0_7] : memref<512x256xbf16, #tpu.memory_space<vmem>>, vector<512x256xbf16>
    %cst_8 = arith.constant dense<0.000000e+00> : vector<8x256xf32>
    %11 = tpu.matmul %9, %10, %cst_8 {dimension_numbers = #tpu.dot_dimension_numbers<[1], [0], [0], [1], [0, 0, 1, 1], [], []>} : vector<8x512xbf16>, vector<512x256xbf16>, vector<8x256xf32> -> vector<8x256xf32>
    %c0_9 = arith.constant 0 : index
    %c0_10 = arith.constant 0 : index
    %12 = vector.load %arg5[%c0_9, %c0_10] : memref<1x256xf32, #tpu.memory_space<vmem>>, vector<1x256xf32>
    %13 = vector.broadcast %12 : vector<1x256xf32> to vector<8x256xf32>
    %14 = arith.addf %11, %13 : vector<8x256xf32>
    %cst_11 = arith.constant 0.000000e+00 : f32
    %15 = vector.broadcast %cst_11 : f32 to vector<8x256xf32>
    %16 = arith.maximumf %14, %15 : vector<8x256xf32>
    %17 = arith.truncf %16 : vector<8x256xf32> to vector<8x256xbf16>
    %c0_12 = arith.constant 0 : index
    %c0_13 = arith.constant 0 : index
    %18 = vector.load %arg6[%c0_12, %c0_13] : memref<256x128xbf16, #tpu.memory_space<vmem>>, vector<256x128xbf16>
    %cst_14 = arith.constant dense<0.000000e+00> : vector<8x128xf32>
    %19 = tpu.matmul %17, %18, %cst_14 {dimension_numbers = #tpu.dot_dimension_numbers<[1], [0], [0], [1], [0, 0, 1, 1], [], []>} : vector<8x256xbf16>, vector<256x128xbf16>, vector<8x128xf32> -> vector<8x128xf32>
    %c0_15 = arith.constant 0 : index
    %c0_16 = arith.constant 0 : index
    %20 = vector.load %arg7[%c0_15, %c0_16] : memref<1x128xf32, #tpu.memory_space<vmem>>, vector<1x128xf32>
    %21 = vector.broadcast %20 : vector<1x128xf32> to vector<8x128xf32>
    %22 = arith.addf %19, %21 : vector<8x128xf32>
    %cst_17 = arith.constant 0.000000e+00 : f32
    %23 = vector.broadcast %cst_17 : f32 to vector<8x128xf32>
    %24 = arith.maximumf %22, %23 : vector<8x128xf32>
    %25 = arith.truncf %24 : vector<8x128xf32> to vector<8x128xbf16>
    %c0_18 = arith.constant 0 : index
    %c0_19 = arith.constant 0 : index
    %26 = vector.load %arg8[%c0_18, %c0_19] : memref<128x128xbf16, #tpu.memory_space<vmem>>, vector<128x128xbf16>
    %cst_20 = arith.constant dense<0.000000e+00> : vector<8x128xf32>
    %27 = tpu.matmul %25, %26, %cst_20 {dimension_numbers = #tpu.dot_dimension_numbers<[1], [0], [0], [1], [0, 0, 1, 1], [], []>} : vector<8x128xbf16>, vector<128x128xbf16>, vector<8x128xf32> -> vector<8x128xf32>
    %c0_21 = arith.constant 0 : index
    %c0_22 = arith.constant 0 : index
    %28 = vector.load %arg9[%c0_21, %c0_22] : memref<1x128xf32, #tpu.memory_space<vmem>>, vector<1x128xf32>
    %29 = vector.broadcast %28 : vector<1x128xf32> to vector<8x128xf32>
    %30 = arith.addf %27, %29 : vector<8x128xf32>
    %cst_23 = arith.constant 0.000000e+00 : f32
    %31 = vector.broadcast %cst_23 : f32 to vector<8x128xf32>
    %32 = arith.maximumf %30, %31 : vector<8x128xf32>
    %33 = arith.truncf %32 : vector<8x128xf32> to vector<8x128xbf16>
    %c0_24 = arith.constant 0 : index
    %c0_25 = arith.constant 0 : index
    %34 = vector.load %arg10[%c0_24, %c0_25] : memref<128x128xbf16, #tpu.memory_space<vmem>>, vector<128x128xbf16>
    %cst_26 = arith.constant dense<0.000000e+00> : vector<8x128xf32>
    %35 = tpu.matmul %33, %34, %cst_26 {dimension_numbers = #tpu.dot_dimension_numbers<[1], [0], [0], [1], [0, 0, 1, 1], [], []>} : vector<8x128xbf16>, vector<128x128xbf16>, vector<8x128xf32> -> vector<8x128xf32>
    %c0_27 = arith.constant 0 : index
    %c0_28 = arith.constant 0 : index
    %36 = vector.load %arg11[%c0_27, %c0_28] : memref<1x128xf32, #tpu.memory_space<vmem>>, vector<1x128xf32>
    %37 = vector.broadcast %36 : vector<1x128xf32> to vector<8x128xf32>
    %38 = arith.addf %35, %37 : vector<8x128xf32>
    %c0_29 = arith.constant 0 : index
    %c0_30 = arith.constant 0 : index
    %39 = vector.load %arg12[%c0_29, %c0_30] : memref<8x128xf32, #tpu.memory_space<vmem>>, vector<8x128xf32>
    tpu.vector_store %arg12[%c0_29, %c0_30], %38 {strides = array<i32>} : memref<8x128xf32, #tpu.memory_space<vmem>>, vector<8x128xf32>,
    return
  }
  func.func @transform_0(%arg0: i32) -> (i32, i32) {
    %c0_i32 = arith.constant 0 : i32
    %c0_i32_0 = arith.constant 0 : i32
    return %arg0, %c0_i32 : i32, i32
  }
  func.func @transform_1(%arg0: i32) -> (i32, i32) {
    %c0_i32 = arith.constant 0 : i32
    %c0_i32_0 = arith.constant 0 : i32
    %c0_i32_1 = arith.constant 0 : i32
    return %c0_i32, %c0_i32_0 : i32, i32
  }
  func.func @transform_2(%arg0: i32) -> (i32, i32) {
    %c0_i32 = arith.constant 0 : i32
    %c0_i32_0 = arith.constant 0 : i32
    %c0_i32_1 = arith.constant 0 : i32
    return %c0_i32, %c0_i32_0 : i32, i32
  }
  func.func @transform_3(%arg0: i32) -> (i32, i32) {
    %c0_i32 = arith.constant 0 : i32
    %c0_i32_0 = arith.constant 0 : i32
    %c0_i32_1 = arith.constant 0 : i32
    return %c0_i32, %c0_i32_0 : i32, i32
  }
  func.func @transform_4(%arg0: i32) -> (i32, i32) {
    %c0_i32 = arith.constant 0 : i32
    %c0_i32_0 = arith.constant 0 : i32
    %c0_i32_1 = arith.constant 0 : i32
    return %c0_i32, %c0_i32_0 : i32, i32
  }
  func.func @transform_5(%arg0: i32) -> (i32, i32) {
    %c0_i32 = arith.constant 0 : i32
    %c0_i32_0 = arith.constant 0 : i32
    %c0_i32_1 = arith.constant 0 : i32
    return %c0_i32, %c0_i32_0 : i32, i32
  }
  func.func @transform_6(%arg0: i32) -> (i32, i32) {
    %c0_i32 = arith.constant 0 : i32
    %c0_i32_0 = arith.constant 0 : i32
    %c0_i32_1 = arith.constant 0 : i32
    return %c0_i32, %c0_i32_0 : i32, i32
  }
  func.func @transform_7(%arg0: i32) -> (i32, i32) {
    %c0_i32 = arith.constant 0 : i32
    %c0_i32_0 = arith.constant 0 : i32
    %c0_i32_1 = arith.constant 0 : i32
    return %c0_i32, %c0_i32_0 : i32, i32
  }
  func.func @transform_8(%arg0: i32) -> (i32, i32) {
    %c0_i32 = arith.constant 0 : i32
    %c0_i32_0 = arith.constant 0 : i32
    %c0_i32_1 = arith.constant 0 : i32
    return %c0_i32, %c0_i32_0 : i32, i32
  }
  func.func @transform_9(%arg0: i32) -> (i32, i32) {
    %c0_i32 = arith.constant 0 : i32
    %c0_i32_0 = arith.constant 0 : i32
    %c0_i32_1 = arith.constant 0 : i32
    return %c0_i32, %c0_i32_0 : i32, i32
  }
  func.func @transform_10(%arg0: i32) -> (i32, i32) {
    %c0_i32 = arith.constant 0 : i32
    %c0_i32_0 = arith.constant 0 : i32
    %c0_i32_1 = arith.constant 0 : i32
    return %c0_i32, %c0_i32_0 : i32, i32
  }
  func.func @transform_11(%arg0: i32) -> (i32, i32) {
    %c0_i32 = arith.constant 0 : i32
    %c0_i32_0 = arith.constant 0 : i32
    return %arg0, %c0_i32 : i32, i32
  }
}

</mosaic_0001>

<bundles_post_ra>
// kernel: net_forward.1
= control target key start
LH: loop header
LB: loop body
LE: loop exit
PB: predicated region body
PF: predicated region fallthrough
CT: control target
= control target key end

     0   :  { %16 = vsyncpa [#allocation3], 0  ;;  %s4658_s0 = inlined_call_operand.vmem [shape: f32[8,784], index: 0, kind: input, shape index: {}]   ;;  %s4659_s1 = inlined_call_operand.hbm [shape: bf16[784,512], index: 1, kind: input, shape index: {}]   ;;  %s4660_s2 = inlined_call_operand.vmem [shape: f32[1,512], index: 2, kind: input, shape index: {}]   ;;  %s4661_s3 = inlined_call_operand.vmem [shape: bf16[512,256], index: 3, kind: input, shape index: {}]   ;;  %s4662_s4 = inlined_call_operand.vmem [shape: f32[1,256], index: 4, kind: input, shape index: {}]   ;;  %s4663_s5 = inlined_call_operand.vmem [shape: bf16[256,128], index: 5, kind: input, shape index: {}]   ;;  %s4664_s6 = inlined_call_operand.vmem [shape: f32[1,128], index: 6, kind: input, shape index: {}]   ;;  %s4665_s7 = inlined_call_operand.vmem [shape: bf16[128,128], index: 7, kind: input, shape index: {}]   ;;  %s4666_s8 = inlined_call_operand.vmem [shape: f32[1,128], index: 8, kind: input, shape index: {}]   ;;  %s4667_s9 = inlined_call_operand.vmem [shape: bf16[128,128], index: 9, kind: input, shape index: {}]   ;;  %s4668_s10 = inlined_call_operand.vmem [shape: f32[1,128], index: 10, kind: input, shape index: {}]   ;;  %s4669_s11 = inlined_call_operand.hbm [shape: f32[8,128], index: 11, kind: output, shape index: {}]  }
   0x1   :  { %17 = vsyncpa [#allocation4], 0  ;;  %s24_s19 = sshll.u32 %s4659_s1, 4  ;;  %s3995_s20 = smov [#allocation2]   ;;  %s25_s19 = int_to_ptr.hbm [resolvable:$true] %s24_s19 }
   0x2   :  { %s26_s21 = sshll.u32 %s3995_s20, 4  ;;  %s3996_s22 = smov 256   ;;  %s27_s21 = int_to_ptr.vmem [resolvable:$true] %s26_s21 }
   0x3   :  { %s3997_s23 = smov 16  }
   0x4   :  { %32 = dma.hbm_to_vmem [thread:$0]  %s25_s19, 25088, %s27_s21, [#allocation3], %s3996_s22, %s3996_s22, %s3997_s23  }
   0x5   :  { %3991 = dma.done.wait [#allocation3], 25088  }
   0x6   :  { %3992 = vsyncadd [#allocation3], 4294942208  ;;  %v2586_v0 = vld [vmem:[#allocation2 + $0xe0] sm:$0xf]  ;;  %v3674_v1 = vld [vmem:[#allocation2 + $0xec] sm:$0xf0] }
   0x7   :  { %v2714_v2 = vld [vmem:[#allocation2 + $0x1e0] sm:$0xf]  ;;  %v2587_v3 = vor.u32 %v3674_v1, %v2586_v0  ;;  %v3706_v4 = vld [vmem:[#allocation2 + $0x1ec] sm:$0xf0]  ;;  %vm1256_vm0 = vcmask 130048   ;;  %s3998_s27 = smov [#allocation5]  }
   0x8   :  { %v2842_v5 = vld [vmem:[#allocation2 + $0x2e0] sm:$0xf]  ;;  %v3738_v6 = vld [vmem:[#allocation2 + $0x2ec] sm:$0xf0]  ;;  %v2715_v7 = vor.u32 %v3706_v4, %v2714_v2  ;;  %s2460_s28 = sshll.u32 %s3998_s27, 4  ;;  %s2461_s28 = int_to_ptr.vmem [resolvable:$true] %s2460_s28 }
   0x9   :  { %v2843_v8 = vor.u32 %v3738_v6, %v2842_v5  ;;  %v2970_v9 = vld [vmem:[#allocation2 + $0x3e0] sm:$0xf]  ;;  %v3770_v10 = vld [vmem:[#allocation2 + $0x3ec] sm:$0xf0]  ;;  %1260 = vmatpush.bf16.msra.mxu0 %v2587_v3 }
   0xa   :  { %v2570_v11 = vld [vmem:[#allocation2 + $0xc0] sm:$0xf]  ;;  %v2971_v12 = vor.u32 %v3770_v10, %v2970_v9  ;;  %v3670_v13 = vld [vmem:[#allocation2 + $0xcc] sm:$0xf0]  ;;  %1273 = vmatpush.bf16.msra.mxu1 %v2715_v7 }
   0xb   :  { %v2698_v14 = vld [vmem:[#allocation2 + $0x1c0] sm:$0xf]  ;;  %v3702_v15 = vld [vmem:[#allocation2 + $0x1cc] sm:$0xf0]  ;;  %1286 = vmatpush.bf16.msra.mxu2 %v2843_v8  ;;  %v2571_v16 = vor.u32 %v3670_v13, %v2570_v11 }
   0xc   :  { %v2699_v17 = vor.u32 %v3702_v15, %v2698_v14  ;;  %v2826_v18 = vld [vmem:[#allocation2 + $0x2c0] sm:$0xf]  ;;  %v3734_v19 = vld [vmem:[#allocation2 + $0x2cc] sm:$0xf0]  ;;  %1299 = vmatpush.bf16.msra.mxu3 %v2971_v12 }
   0xd   :  { %v2954_v20 = vld [vmem:[#allocation2 + $0x3c0] sm:$0xf]  ;;  %v2827_v21 = vor.u32 %v3734_v19, %v2826_v18  ;;  %v3766_v22 = vld [vmem:[#allocation2 + $0x3cc] sm:$0xf0]  ;;  %1261 = vmatpush.bf16.msra.mxu0 %v2571_v16 }
   0xe   :  { %v2554_v23 = vld [vmem:[#allocation2 + $0xa0] sm:$0xf]  ;;  %v3666_v24 = vld [vmem:[#allocation2 + $0xac] sm:$0xf0]  ;;  %v2955_v25 = vor.u32 %v3766_v22, %v2954_v20  ;;  %1274 = vmatpush.bf16.msra.mxu1 %v2699_v17 }
   0xf   :  { %v2682_v26 = vld [vmem:[#allocation2 + $0x1a0] sm:$0xf]  ;;  %v3698_v27 = vld [vmem:[#allocation2 + $0x1ac] sm:$0xf0]  ;;  %v2555_v29 = vor.u32 %v3666_v24, %v2554_v23  ;;  %1287 = vmatpush.bf16.msra.mxu2 %v2827_v21 }
  0x10   :  { %v2810_v28 = vld [vmem:[#allocation2 + $0x2a0] sm:$0xf]  ;;  %v3730_v30 = vld [vmem:[#allocation2 + $0x2ac] sm:$0xf0]  ;;  %v2683_v33 = vor.u32 %v3698_v27, %v2682_v26  ;;  %1300 = vmatpush.bf16.msra.mxu3 %v2955_v25 }
  0x11   :  { %v2938_v31 = vld [vmem:[#allocation2 + $0x3a0] sm:$0xf]  ;;  %v3762_v32 = vld [vmem:[#allocation2 + $0x3ac] sm:$0xf0]  ;;  %v2811_v34 = vor.u32 %v3730_v30, %v2810_v28  ;;  %1262 = vmatpush.bf16.msra.mxu0 %v2555_v29 }
  0x12   :  { %v2538_v35 = vld [vmem:[#allocation2 + $0x80] sm:$0xf]  ;;  %v3662_v36 = vld [vmem:[#allocation2 + $0x8c] sm:$0xf0]  ;;  %v2939_v38 = vor.u32 %v3762_v32, %v2938_v31  ;;  %1275 = vmatpush.bf16.msra.mxu1 %v2683_v33  ;;  %v3672_v33 = vld [vmem:[#allocation2 + $0xe4] sm:$0xf] }
  0x13   :  { %v2666_v37 = vld [vmem:[#allocation2 + $0x180] sm:$0xf]  ;;  %v3694_v39 = vld [vmem:[#allocation2 + $0x18c] sm:$0xf0]  ;;  %v2539_v44 = vor.u32 %v3662_v36, %v2538_v35  ;;  %1288 = vmatpush.bf16.msra.mxu2 %v2811_v34  ;;  %v2588_v34 = vld [vmem:[#allocation2 + $0xf0] sm:$0xf0] }
  0x14   :  { %v2794_v40 = vld [vmem:[#allocation2 + $0x280] sm:$0xf]  ;;  %v3726_v41 = vld [vmem:[#allocation2 + $0x28c] sm:$0xf0]  ;;  %v2667_v45 = vor.u32 %v3694_v39, %v2666_v37  ;;  %1301 = vmatpush.bf16.msra.mxu3 %v2939_v38 }
  0x15   :  { %v2922_v42 = vld [vmem:[#allocation2 + $0x380] sm:$0xf]  ;;  %v3758_v43 = vld [vmem:[#allocation2 + $0x38c] sm:$0xf0]  ;;  %v2795_v46 = vor.u32 %v3726_v41, %v2794_v40  ;;  %1263 = vmatpush.bf16.msra.mxu0 %v2539_v44  ;;  %v2716_v44 = vld [vmem:[#allocation2 + $0x1f0] sm:$0xf0] }
  0x16   :  { %v2522_v47 = vld [vmem:[#allocation2 + $0x60] sm:$0xf]  ;;  %v3658_v48 = vld [vmem:[#allocation2 + $0x6c] sm:$0xf0]  ;;  %v2923_v50 = vor.u32 %v3758_v43, %v2922_v42  ;;  %1276 = vmatpush.bf16.msra.mxu1 %v2667_v45  ;;  %v3704_v43 = vld [vmem:[#allocation2 + $0x1e4] sm:$0xf] }
  0x17   :  { %v2650_v49 = vld [vmem:[#allocation2 + $0x160] sm:$0xf]  ;;  %v3690_v51 = vld [vmem:[#allocation2 + $0x16c] sm:$0xf0]  ;;  %v2523_v56 = vor.u32 %v3658_v48, %v2522_v47  ;;  %1289 = vmatpush.bf16.msra.mxu2 %v2795_v46  ;;  %v59_v45 = vld [vmem:[%s4658_s0 + $0x18] sm:$0xff]  ;;  %v2591_v47 = vor.u32 %v3672_v33, %v2588_v34 }
  0x18   :  { %v2778_v52 = vld [vmem:[#allocation2 + $0x260] sm:$0xf]  ;;  %v3722_v53 = vld [vmem:[#allocation2 + $0x26c] sm:$0xf0]  ;;  %v2651_v57 = vor.u32 %v3690_v51, %v2650_v49  ;;  %1302 = vmatpush.bf16.msra.mxu3 %v2923_v50 }
  0x19   :  { %v2906_v54 = vld [vmem:[#allocation2 + $0x360] sm:$0xf]  ;;  %v3754_v55 = vld [vmem:[#allocation2 + $0x36c] sm:$0xf0]  ;;  %v2779_v58 = vor.u32 %v3722_v53, %v2778_v52  ;;  %1264 = vmatpush.bf16.msra.mxu0 %v2523_v56  ;;  %v3668_v53 = vld [vmem:[#allocation2 + $0xc4] sm:$0xf] }
  0x1a   :  { %v2506_v59 = vld [vmem:[#allocation2 + $0x40] sm:$0xf]  ;;  %v3654_v60 = vld [vmem:[#allocation2 + $0x4c] sm:$0xf0]  ;;  %v2907_v62 = vor.u32 %v3754_v55, %v2906_v54  ;;  %1277 = vmatpush.bf16.msra.mxu1 %v2651_v57  ;;  %v2572_v54 = vld [vmem:[#allocation2 + $0xd0] sm:$0xf0]  ;;  %v4075_v57 = vpack.c.bf16 %v59_v45, %v59_v45 }
  0x1b   :  { %v2634_v61 = vld [vmem:[#allocation2 + $0x140] sm:$0xf]  ;;  %v3686_v63 = vld [vmem:[#allocation2 + $0x14c] sm:$0xf0]  ;;  %v2507_v4 = vor.u32 %v3654_v60, %v2506_v59  ;;  %1290 = vmatpush.bf16.msra.mxu2 %v2779_v58  ;;  %v57_v58 = vld [vmem:[%s4658_s0 + $0x8] sm:$0xff]  ;;  %v2719_v59 = vor.u32 %v3704_v43, %v2716_v44 }
  0x1c   :  { %v2762_v0 = vld [vmem:[#allocation2 + $0x240] sm:$0xf]  ;;  %v3718_v1 = vld [vmem:[#allocation2 + $0x24c] sm:$0xf0]  ;;  %v2635_v5 = vor.u32 %v3686_v63, %v2634_v61  ;;  %1303 = vmatpush.bf16.msra.mxu3 %v2907_v62  ;;  %v3700_v61 = vld [vmem:[#allocation2 + $0x1c4] sm:$0xf] }
  0x1d   :  { %v2890_v2 = vld [vmem:[#allocation2 + $0x340] sm:$0xf]  ;;  %v3750_v3 = vld [vmem:[#allocation2 + $0x34c] sm:$0xf0]  ;;  %v2763_v6 = vor.u32 %v3718_v1, %v2762_v0  ;;  %1265 = vmatpush.bf16.msra.mxu0 %v2507_v4  ;;  %v2700_v62 = vld [vmem:[#allocation2 + $0x1d0] sm:$0xf0]  ;;  %v2575_v0 = vor.u32 %v3668_v53, %v2572_v54 }
  0x1e   :  { %v2490_v7 = vld [vmem:[#allocation2 + $0x20] sm:$0xf]  ;;  %v3650_v8 = vld [vmem:[#allocation2 + $0x2c] sm:$0xf0]  ;;  %v2891_v10 = vor.u32 %v3750_v3, %v2890_v2  ;;  %1278 = vmatpush.bf16.msra.mxu1 %v2635_v5  ;;  %v3664_v5 = vld [vmem:[#allocation2 + $0xa4] sm:$0xf] }
  0x1f   :  { %v2618_v9 = vld [vmem:[#allocation2 + $0x120] sm:$0xf]  ;;  %v3682_v11 = vld [vmem:[#allocation2 + $0x12c] sm:$0xf0]  ;;  %v2491_v16 = vor.u32 %v3650_v8, %v2490_v7  ;;  %1291 = vmatpush.bf16.msra.mxu2 %v2763_v6  ;;  %v2556_v6 = vld [vmem:[#allocation2 + $0xb0] sm:$0xf0]  ;;  %v4082_v7 = vpack.c.bf16 %v57_v58, %v57_v58  ;;  %v2703_v8 = vor.u32 %v3700_v61, %v2700_v62 }
  0x20   :  { %v2746_v12 = vld [vmem:[#allocation2 + $0x220] sm:$0xf]  ;;  %v3714_v13 = vld [vmem:[#allocation2 + $0x22c] sm:$0xf0]  ;;  %v2619_v20 = vor.u32 %v3682_v11, %v2618_v9  ;;  %1304 = vmatpush.bf16.msra.mxu3 %v2891_v10  ;;  %v3696_v10 = vld [vmem:[#allocation2 + $0x1a4] sm:$0xf] }
  0x21   :  { %v2874_v14 = vld [vmem:[#allocation2 + $0x320] sm:$0xf]  ;;  %v3746_v15 = vld [vmem:[#allocation2 + $0x32c] sm:$0xf0]  ;;  %v2747_v21 = vor.u32 %v3714_v13, %v2746_v12  ;;  %1266 = vmatpush.bf16.msra.mxu0 %v2491_v16  ;;  %v2684_v11 = vld [vmem:[#allocation2 + $0x1b0] sm:$0xf0]  ;;  %v2559_v13 = vor.u32 %v3664_v5, %v2556_v6 }
  0x22   :  { %v2474_v17 = vld [vmem:[#allocation2] sm:$0xf]  ;;  %v3646_v18 = vld [vmem:[#allocation2 + $0xc] sm:$0xf0]  ;;  %v2875_v25 = vor.u32 %v3746_v15, %v2874_v14  ;;  %1279 = vmatpush.bf16.msra.mxu1 %v2619_v20  ;;  %v2687_v20 = vor.u32 %v3696_v10, %v2684_v11  ;;  %v3652_v43 = vld [vmem:[#allocation2 + $0x44] sm:$0xf] }
  0x23   :  { %v2602_v19 = vld [vmem:[#allocation2 + $0x100] sm:$0xf]  ;;  %v3678_v22 = vld [vmem:[#allocation2 + $0x10c] sm:$0xf0]  ;;  %v2475_v32 = vor.u32 %v3646_v18, %v2474_v17  ;;  %1292 = vmatpush.bf16.msra.mxu2 %v2747_v21  ;;  %v3660_v18 = vld [vmem:[#allocation2 + $0x84] sm:$0xf] }
  0x24   :  { %v2730_v23 = vld [vmem:[#allocation2 + $0x200] sm:$0xf]  ;;  %v3710_v24 = vld [vmem:[#allocation2 + $0x20c] sm:$0xf0]  ;;  %v2603_v36 = vor.u32 %v3678_v22, %v2602_v19  ;;  %1305 = vmatpush.bf16.msra.mxu3 %v2875_v25  ;;  %v2540_v19 = vld [vmem:[#allocation2 + $0x90] sm:$0xf0] }
  0x25   :  { %v2858_v26 = vld [vmem:[#allocation2 + $0x300] sm:$0xf]  ;;  %v3742_v27 = vld [vmem:[#allocation2 + $0x30c] sm:$0xf0]  ;;  %v2731_v37 = vor.u32 %v3710_v24, %v2730_v23  ;;  %1267 = vmatpush.bf16.msra.mxu0 %v2475_v32  ;;  %v3692_v22 = vld [vmem:[#allocation2 + $0x184] sm:$0xf]  ;;  %v2543_v25 = vor.u32 %v3660_v18, %v2540_v19 }
  0x26   :  { %v3098_v28 = vld [vmem:[#allocation2 + $0x4e0] sm:$0xf]  ;;  %v3802_v29 = vld [vmem:[#allocation2 + $0x4ec] sm:$0xf0]  ;;  %v2859_v41 = vor.u32 %v3742_v27, %v2858_v26  ;;  %1280 = vmatpush.bf16.msra.mxu1 %v2603_v36  ;;  %v2668_v23 = vld [vmem:[#allocation2 + $0x190] sm:$0xf0] }
  0x27   :  { %v3226_v30 = vld [vmem:[#allocation2 + $0x5e0] sm:$0xf]  ;;  %v3834_v31 = vld [vmem:[#allocation2 + $0x5ec] sm:$0xf0]  ;;  %v3099_v42 = vor.u32 %v3802_v29, %v3098_v28  ;;  %1293 = vmatpush.bf16.msra.mxu2 %v2731_v37  ;;  %v2671_v33 = vor.u32 %v3692_v22, %v2668_v23  ;;  %v2652_v36 = vld [vmem:[#allocation2 + $0x170] sm:$0xf0] }
  0x28   :  { %v58_v35 = vld [vmem:[%s4658_s0 + $0x10] sm:$0xff]  ;;  %v3242_v38 = vld [vmem:[#allocation2 + $0x600] sm:$0xf]  ;;  %v3227_v46 = vor.u32 %v3834_v31, %v3226_v30  ;;  %1306 = vmatpush.bf16.msra.mxu3 %v2859_v41  ;;  %v3656_v30 = vld [vmem:[#allocation2 + $0x64] sm:$0xf] }
  0x29   :  { %v3838_v39 = vld [vmem:[#allocation2 + $0x60c] sm:$0xf0]  ;;  %v56_v40 = vld [vmem:[%s4658_s0] sm:$0xff]  ;;  %v4071_v51 = vpack.c.bf16 %v58_v35, %v58_v35  ;;  %1312 = vmatpush.bf16.msrb.mxu0 %v3099_v42  ;;  %1281 = vmatmul.bf16.vlgmr.msra.gmra.mxu1 %v4082_v7  ;;  %v2524_v31 = vld [vmem:[#allocation2 + $0x70] sm:$0xf0] }
  0x2a   :  { %v3082_v48 = vld [vmem:[#allocation2 + $0x4c0] sm:$0xf]  ;;  %v3798_v49 = vld [vmem:[#allocation2 + $0x4cc] sm:$0xf0]  ;;  %v4073_v55 = vpack.c.bf16 %v56_v40, %v56_v40  ;;  %v3243_v56 = vor.u32 %v3838_v39, %v3242_v38  ;;  %1325 = vmatpush.bf16.msrb.mxu1 %v3227_v46  ;;  %v3688_v35 = vld [vmem:[#allocation2 + $0x164] sm:$0xf]  ;;  %v2527_v38 = vor.u32 %v3656_v30, %v2524_v31 }
  0x2b   :  { %v3210_v50 = vld [vmem:[#allocation2 + $0x5c0] sm:$0xf]  ;;  %v3830_v52 = vld [vmem:[#allocation2 + $0x5cc] sm:$0xf0]  ;;  %v3083_v60 = vor.u32 %v3798_v49, %v3082_v48  ;;  %1294 = vmatmul.bf16.vlgmr.msra.gmra.mxu2 %v4071_v51  ;;  %1307 = vmatmul.bf16.vlgmr.msra.gmra.mxu3 %v4075_v57  ;;  %v2508_v44 = vld [vmem:[#allocation2 + $0x50] sm:$0xf0]  ;;  %v2655_v46 = vor.u32 %v3688_v35, %v2652_v36 }
  0x2c   :  { %1351 = vmatpush.bf16.msrb.mxu3 %v2591_v47  ;;  %v3211_v63 = vor.u32 %v3830_v52, %v3210_v50  ;;  %v3066_v1 = vld [vmem:[#allocation2 + $0x4a0] sm:$0xf]  ;;  %v3794_v2 = vld [vmem:[#allocation2 + $0x4ac] sm:$0xf0]  ;;  %1268 = vmatmul.bf16.vlgmr.msra.gmra.mxu0 %v4073_v55  ;;  %v3684_v48 = vld [vmem:[#allocation2 + $0x144] sm:$0xf]  ;;  %v2511_v52 = vor.u32 %v3652_v43, %v2508_v44 }
  0x2d   :  { %v3194_v3 = vld [vmem:[#allocation2 + $0x5a0] sm:$0xf]  ;;  %v3826_v4 = vld [vmem:[#allocation2 + $0x5ac] sm:$0xf0]  ;;  %1345 = vmatpush.bf16.msrb.mxu2 %v3243_v56  ;;  %1313 = vmatpush.bf16.msrb.mxu0 %v3083_v60  ;;  %v3067_v9 = vor.u32 %v3794_v2, %v3066_v1  ;;  %v2636_v49 = vld [vmem:[#allocation2 + $0x150] sm:$0xf0] }
  0x2e   :  { %1326 = vmatpush.bf16.msrb.mxu1 %v3211_v63  ;;  %v3195_v12 = vor.u32 %v3826_v4, %v3194_v3  ;;  %v3050_v14 = vld [vmem:[#allocation2 + $0x480] sm:$0xf]  ;;  %v3790_v15 = vld [vmem:[#allocation2 + $0x48c] sm:$0xf0]  ;;  %v2492_v60 = vld [vmem:[#allocation2 + $0x30] sm:$0xf0]  ;;  %v2639_v61 = vor.u32 %v3684_v48, %v2636_v49 }
  0x2f   :  { %v3178_v16 = vld [vmem:[#allocation2 + $0x580] sm:$0xf]  ;;  %v3822_v17 = vld [vmem:[#allocation2 + $0x58c] sm:$0xf0]  ;;  %v3051_v21 = vor.u32 %v3790_v15, %v3050_v14  ;;  %v3680_v63 = vld [vmem:[#allocation2 + $0x124] sm:$0xf] }
  0x30   :  { %1352 = vmatpush.bf16.msrb.mxu3 %v2575_v0  ;;  %v3179_v24 = vor.u32 %v3822_v17, %v3178_v16  ;;  %v3034_v26 = vld [vmem:[#allocation2 + $0x460] sm:$0xf]  ;;  %v3786_v27 = vld [vmem:[#allocation2 + $0x46c] sm:$0xf0]  ;;  %v2620_v0 = vld [vmem:[#allocation2 + $0x130] sm:$0xf0] }
  0x31   :  { %1364 = vmatpush.bf16.msra.mxu2 %v2719_v59  ;;  %1314 = vmatpush.bf16.msrb.mxu0 %v3067_v9  ;;  %v3162_v28 = vld [vmem:[#allocation2 + $0x560] sm:$0xf]  ;;  %v3818_v29 = vld [vmem:[#allocation2 + $0x56c] sm:$0xf0]  ;;  %v3035_v34 = vor.u32 %v3786_v27, %v3034_v26  ;;  %v3648_v59 = vld [vmem:[#allocation2 + $0x24] sm:$0xf]  ;;  %v2623_v14 = vor.u32 %v3680_v63, %v2620_v0 }
  0x32   :  { %1327 = vmatpush.bf16.msrb.mxu1 %v3195_v12  ;;  %v62_v32 = vld [vmem:[%s4658_s0 + $0x30] sm:$0xff]  ;;  %v3163_v37 = vor.u32 %v3818_v29, %v3162_v28  ;;  %v3018_v39 = vld [vmem:[#allocation2 + $0x440] sm:$0xf]  ;;  %v2495_v3 = vor.u32 %v3648_v59, %v2492_v60  ;;  %v3736_v10 = vld [vmem:[#allocation2 + $0x2e4] sm:$0xf] }
  0x33   :  { %v3782_v40 = vld [vmem:[#allocation2 + $0x44c] sm:$0xf0]  ;;  %v3146_v41 = vld [vmem:[#allocation2 + $0x540] sm:$0xf]  ;;  %v4089_v45 = vpack.c.bf16 %v62_v32, %v62_v32  ;;  %v2476_v9 = vld [vmem:[#allocation2 + $0x10] sm:$0xf0] }
  0x34   :  { %1353 = vmatpush.bf16.msrb.mxu3 %v2559_v13  ;;  %v3814_v42 = vld [vmem:[#allocation2 + $0x54c] sm:$0xf0]  ;;  %v3019_v47 = vor.u32 %v3782_v40, %v3018_v39  ;;  %v3002_v53 = vld [vmem:[#allocation2 + $0x420] sm:$0xf]  ;;  %v2844_v11 = vld [vmem:[#allocation2 + $0x2f0] sm:$0xf0] }
  0x35   :  { %1365 = vmatpush.bf16.msra.mxu2 %v2703_v8  ;;  %1315 = vmatpush.bf16.msrb.mxu0 %v3051_v21  ;;  %v3147_v50 = vor.u32 %v3814_v42, %v3146_v41  ;;  %v3778_v54 = vld [vmem:[#allocation2 + $0x42c] sm:$0xf0]  ;;  %v3130_v56 = vld [vmem:[#allocation2 + $0x520] sm:$0xf]  ;;  %v3644_v8 = vld [vmem:[#allocation2 + $0x4] sm:$0xf] }
  0x36   :  { %1328 = vmatpush.bf16.msrb.mxu1 %v3179_v24  ;;  %v3810_v58 = vld [vmem:[#allocation2 + $0x52c] sm:$0xf0]  ;;  %v3003_v62 = vor.u32 %v3778_v54, %v3002_v53  ;;  %v2986_v1 = vld [vmem:[#allocation2 + $0x400] sm:$0xf]  ;;  %v3768_v12 = vld [vmem:[#allocation2 + $0x3e4] sm:$0xf]  ;;  %v2847_v24 = vor.u32 %v3736_v10, %v2844_v11 }
  0x37   :  { %v3131_v2 = vor.u32 %v3810_v58, %v3130_v56  ;;  %v3774_v4 = vld [vmem:[#allocation2 + $0x40c] sm:$0xf0]  ;;  %v3114_v5 = vld [vmem:[#allocation2 + $0x500] sm:$0xf]  ;;  %v2972_v13 = vld [vmem:[#allocation2 + $0x3f0] sm:$0xf0] }
  0x38   :  { %1354 = vmatpush.bf16.msrb.mxu3 %v2543_v25  ;;  %v3806_v6 = vld [vmem:[#allocation2 + $0x50c] sm:$0xf0]  ;;  %v2987_v15 = vor.u32 %v3774_v4, %v2986_v1  ;;  %v3800_v16 = vld [vmem:[#allocation2 + $0x4e4] sm:$0xf]  ;;  %v3100_v17 = vld [vmem:[#allocation2 + $0x4f0] sm:$0xf0]  ;;  %v2975_v25 = vor.u32 %v3768_v12, %v2972_v13 }
  0x39   :  { %1366 = vmatpush.bf16.msra.mxu2 %v2687_v20  ;;  %1316 = vmatpush.bf16.msrb.mxu0 %v3035_v34  ;;  %v60_v18 = vld [vmem:[%s4658_s0 + $0x20] sm:$0xff]  ;;  %v3115_v19 = vor.u32 %v3806_v6, %v3114_v5  ;;  %v2479_v20 = vor.u32 %v3644_v8, %v2476_v9  ;;  %v2604_v22 = vld [vmem:[#allocation2 + $0x110] sm:$0xf0]  ;;  %v61_v23 = vld [vmem:[%s4658_s0 + $0x28] sm:$0xff]  ;;  %v3103_v29 = vor.u32 %v3800_v16, %v3100_v17 }
  0x3a   :  { %1329 = vmatpush.bf16.msrb.mxu1 %v3163_v37  ;;  %v3676_v21 = vld [vmem:[#allocation2 + $0x104] sm:$0xf]  ;;  %v3228_v27 = vld [vmem:[#allocation2 + $0x5f0] sm:$0xf0]  ;;  %v4099_v30 = vpack.c.bf16 %v60_v18, %v60_v18  ;;  %v4101_v35 = vpack.c.bf16 %v61_v23, %v61_v23 }
  0x3b   :  { %3256 = vmatmul.msk.bf16.vlgmr.msrb.gmra.mxu2 %vm1256_vm0, %v4089_v45  ;;  %v3832_v26 = vld [vmem:[#allocation2 + $0x5e4] sm:$0xf]  ;;  %v2828_v31 = vld [vmem:[#allocation2 + $0x2d0] sm:$0xf0]  ;;  %v2607_v34 = vor.u32 %v3676_v21, %v2604_v22 }
  0x3c   :  { %1355 = vmatpush.bf16.msrb.mxu3 %v2527_v38  ;;  %v3732_v28 = vld [vmem:[#allocation2 + $0x2c4] sm:$0xf]  ;;  %v3084_v37 = vld [vmem:[#allocation2 + $0x4d0] sm:$0xf0]  ;;  %v3231_v38 = vor.u32 %v3832_v26, %v3228_v27 }
  0x3d   :  { %1367 = vmatpush.bf16.msra.mxu2 %v2671_v33  ;;  %1317 = vmatpush.bf16.msrb.mxu0 %v3019_v47  ;;  %v3764_v32 = vld [vmem:[#allocation2 + $0x3c4] sm:$0xf]  ;;  %v2956_v33 = vld [vmem:[#allocation2 + $0x3d0] sm:$0xf0]  ;;  %v2831_v39 = vor.u32 %v3732_v28, %v2828_v31 }
  0x3e   :  { %1330 = vmatpush.bf16.msrb.mxu1 %v3147_v50  ;;  %v3796_v36 = vld [vmem:[#allocation2 + $0x4c4] sm:$0xf]  ;;  %v2959_v40 = vor.u32 %v3764_v32, %v2956_v33  ;;  %v3212_v42 = vld [vmem:[#allocation2 + $0x5d0] sm:$0xf0] }
  0x3f   :  { %v3828_v41 = vld [vmem:[#allocation2 + $0x5c4] sm:$0xf]  ;;  %v3087_v44 = vor.u32 %v3796_v36, %v3084_v37  ;;  %v2940_v48 = vld [vmem:[#allocation2 + $0x3b0] sm:$0xf0] }
  0x40   :  { %1356 = vmatpush.bf16.msrb.mxu3 %v2511_v52  ;;  %v3728_v43 = vld [vmem:[#allocation2 + $0x2a4] sm:$0xf]  ;;  %v3068_v50 = vld [vmem:[#allocation2 + $0x4b0] sm:$0xf0]  ;;  %v3215_v52 = vor.u32 %v3828_v41, %v3212_v42 }
  0x41   :  { %1368 = vmatpush.bf16.msra.mxu2 %v2655_v46  ;;  %1318 = vmatpush.bf16.msrb.mxu0 %v3003_v62  ;;  %v2812_v46 = vld [vmem:[#allocation2 + $0x2b0] sm:$0xf0]  ;;  %v3760_v47 = vld [vmem:[#allocation2 + $0x3a4] sm:$0xf] }
  0x42   :  { %1331 = vmatpush.bf16.msrb.mxu1 %v3131_v2  ;;  %v3792_v49 = vld [vmem:[#allocation2 + $0x4a4] sm:$0xf]  ;;  %v2815_v53 = vor.u32 %v3728_v43, %v2812_v46  ;;  %v2943_v54 = vor.u32 %v3760_v47, %v2940_v48  ;;  %v3196_v58 = vld [vmem:[#allocation2 + $0x5b0] sm:$0xf0] }
  0x43   :  { %v3824_v56 = vld [vmem:[#allocation2 + $0x5a4] sm:$0xf]  ;;  %v3071_v60 = vor.u32 %v3792_v49, %v3068_v50  ;;  %v2924_v63 = vld [vmem:[#allocation2 + $0x390] sm:$0xf0] }
  0x44   :  { %1357 = vmatpush.bf16.msrb.mxu3 %v2495_v3  ;;  %v3724_v59 = vld [vmem:[#allocation2 + $0x284] sm:$0xf]  ;;  %v3052_v1 = vld [vmem:[#allocation2 + $0x490] sm:$0xf0]  ;;  %v3199_v2 = vor.u32 %v3824_v56, %v3196_v58  ;;  %v2594_v56 = vld [vmem:[#allocation2 + $0xe8] sm:$0xf] }
  0x45   :  { %1369 = vmatpush.bf16.msra.mxu2 %v2639_v61  ;;  %1319 = vmatpush.bf16.msrb.mxu0 %v2987_v15  ;;  %v2796_v61 = vld [vmem:[#allocation2 + $0x290] sm:$0xf0]  ;;  %v3756_v62 = vld [vmem:[#allocation2 + $0x384] sm:$0xf]  ;;  %v3675_v58 = vld [vmem:[#allocation2 + $0xf4] sm:$0xf0] }
  0x46   :  { %1332 = vmatpush.bf16.msrb.mxu1 %v3115_v19  ;;  %v3788_v0 = vld [vmem:[#allocation2 + $0x484] sm:$0xf]  ;;  %v2799_v3 = vor.u32 %v3724_v59, %v2796_v61  ;;  %v2927_v4 = vor.u32 %v3756_v62, %v2924_v63  ;;  %v3180_v6 = vld [vmem:[#allocation2 + $0x590] sm:$0xf0]  ;;  %v2850_v62 = vld [vmem:[#allocation2 + $0x2e8] sm:$0xf] }
  0x47   :  { %v3820_v5 = vld [vmem:[#allocation2 + $0x584] sm:$0xf]  ;;  %v3055_v9 = vor.u32 %v3788_v0, %v3052_v1  ;;  %v2780_v10 = vld [vmem:[#allocation2 + $0x270] sm:$0xf0]  ;;  %v3739_v63 = vld [vmem:[#allocation2 + $0x2f4] sm:$0xf0] }
  0x48   :  { %1358 = vmatpush.bf16.msrb.mxu3 %v2479_v20  ;;  %1320 = vmatmul.bf16.vlgmr.msrb.gmra.mxu0 %v4099_v30  ;;  %v3720_v8 = vld [vmem:[#allocation2 + $0x264] sm:$0xf]  ;;  %v2908_v12 = vld [vmem:[#allocation2 + $0x370] sm:$0xf0]  ;;  %v3183_v15 = vor.u32 %v3820_v5, %v3180_v6  ;;  %v2595_v5 = vor.u32 %v3675_v58, %v2594_v56  ;;  %v2978_v6 = vld [vmem:[#allocation2 + $0x3e8] sm:$0xf] }
  0x49   :  { %1370 = vmatpush.bf16.msra.mxu2 %v2623_v14  ;;  %1377 = vmatpush.bf16.msra.mxu0 %v2847_v24  ;;  %v3752_v11 = vld [vmem:[#allocation2 + $0x364] sm:$0xf]  ;;  %v3036_v14 = vld [vmem:[#allocation2 + $0x470] sm:$0xf0]  ;;  %v2783_v16 = vor.u32 %v3720_v8, %v2780_v10  ;;  %v3771_v8 = vld [vmem:[#allocation2 + $0x3f4] sm:$0xf0] }
  0x4a   :  { %1390 = vmatpush.bf16.msra.mxu1 %v2975_v25  ;;  %v3784_v13 = vld [vmem:[#allocation2 + $0x464] sm:$0xf]  ;;  %v2911_v17 = vor.u32 %v3752_v11, %v2908_v12  ;;  %v3164_v19 = vld [vmem:[#allocation2 + $0x570] sm:$0xf0]  ;;  %v2722_v10 = vld [vmem:[#allocation2 + $0x1e8] sm:$0xf]  ;;  %v2851_v12 = vor.u32 %v3739_v63, %v2850_v62 }
  0x4b   :  { %1333 = vmatmul.bf16.vlgmr.msrb.gmra.mxu1 %v4101_v35  ;;  %1359 = vmatmul.bf16.vlgmr.msrb.gmra.mxu3 %v4073_v55  ;;  %v3816_v18 = vld [vmem:[#allocation2 + $0x564] sm:$0xf]  ;;  %v3039_v21 = vor.u32 %v3784_v13, %v3036_v14  ;;  %v2764_v22 = vld [vmem:[#allocation2 + $0x250] sm:$0xf0]  ;;  %v3707_v11 = vld [vmem:[#allocation2 + $0x1f4] sm:$0xf0] }
  0x4c   :  { %1403 = vmatpush.bf16.msra.mxu3 %v3103_v29  ;;  %v3716_v20 = vld [vmem:[#allocation2 + $0x244] sm:$0xf]  ;;  %v2892_v24 = vld [vmem:[#allocation2 + $0x350] sm:$0xf0]  ;;  %v3167_v27 = vor.u32 %v3816_v18, %v3164_v19  ;;  %v2578_v14 = vld [vmem:[#allocation2 + $0xc8] sm:$0xf]  ;;  %v2723_v19 = vor.u32 %v3707_v11, %v2722_v10 }
  0x4d   :  { %1371 = vmatpush.bf16.msra.mxu2 %v2607_v34  ;;  %1378 = vmatpush.bf16.msra.mxu0 %v2831_v39  ;;  %v3748_v23 = vld [vmem:[#allocation2 + $0x344] sm:$0xf]  ;;  %v3020_v26 = vld [vmem:[#allocation2 + $0x450] sm:$0xf0]  ;;  %v2767_v28 = vor.u32 %v3716_v20, %v2764_v22  ;;  %v3735_v18 = vld [vmem:[#allocation2 + $0x2d4] sm:$0xf0] }
  0x4e   :  { %1391 = vmatpush.bf16.msra.mxu1 %v2959_v40  ;;  %v3780_v25 = vld [vmem:[#allocation2 + $0x444] sm:$0xf]  ;;  %v2895_v29 = vor.u32 %v3748_v23, %v2892_v24  ;;  %v3148_v32 = vld [vmem:[#allocation2 + $0x550] sm:$0xf0]  ;;  %v2962_v20 = vld [vmem:[#allocation2 + $0x3c8] sm:$0xf] }
  0x4f   :  { %v3812_v31 = vld [vmem:[#allocation2 + $0x544] sm:$0xf]  ;;  %v3023_v34 = vor.u32 %v3780_v25, %v3020_v26  ;;  %v2748_v36 = vld [vmem:[#allocation2 + $0x230] sm:$0xf0]  ;;  %v2706_v23 = vld [vmem:[#allocation2 + $0x1c8] sm:$0xf] }
  0x50   :  { %1404 = vmatpush.bf16.msra.mxu3 %v3087_v44  ;;  %1372 = vmatmul.bf16.vlgmr.msra.gmra.mxu2 %v4082_v7  ;;  %v3712_v33 = vld [vmem:[#allocation2 + $0x224] sm:$0xf]  ;;  %v3004_v40 = vld [vmem:[#allocation2 + $0x430] sm:$0xf0]  ;;  %v3151_v42 = vor.u32 %v3812_v31, %v3148_v32  ;;  %v3703_v24 = vld [vmem:[#allocation2 + $0x1d4] sm:$0xf0] }
  0x51   :  { %1416 = vmatpush.bf16.msrb.mxu2 %v3231_v38  ;;  %1379 = vmatpush.bf16.msra.mxu0 %v2815_v53  ;;  %v3744_v37 = vld [vmem:[#allocation2 + $0x324] sm:$0xf]  ;;  %v2876_v38 = vld [vmem:[#allocation2 + $0x330] sm:$0xf0]  ;;  %v2751_v47 = vor.u32 %v3712_v33, %v2748_v36  ;;  %v2562_v26 = vld [vmem:[#allocation2 + $0xa8] sm:$0xf]  ;;  %v2707_v32 = vor.u32 %v3703_v24, %v2706_v23 }
  0x52   :  { %1392 = vmatpush.bf16.msra.mxu1 %v2943_v54  ;;  %v3776_v39 = vld [vmem:[#allocation2 + $0x424] sm:$0xf]  ;;  %v3132_v43 = vld [vmem:[#allocation2 + $0x530] sm:$0xf0]  ;;  %v2879_v48 = vor.u32 %v3744_v37, %v2876_v38  ;;  %v3731_v31 = vld [vmem:[#allocation2 + $0x2b4] sm:$0xf0] }
  0x53   :  { %v3808_v41 = vld [vmem:[#allocation2 + $0x524] sm:$0xf]  ;;  %v2732_v46 = vld [vmem:[#allocation2 + $0x210] sm:$0xf0]  ;;  %v3007_v53 = vor.u32 %v3776_v39, %v3004_v40  ;;  %v2946_v33 = vld [vmem:[#allocation2 + $0x3a8] sm:$0xf] }
  0x54   :  { %1405 = vmatpush.bf16.msra.mxu3 %v3071_v60  ;;  %v3708_v44 = vld [vmem:[#allocation2 + $0x204] sm:$0xf]  ;;  %v2860_v50 = vld [vmem:[#allocation2 + $0x310] sm:$0xf0]  ;;  %v3135_v60 = vor.u32 %v3808_v41, %v3132_v43  ;;  %v2690_v37 = vld [vmem:[#allocation2 + $0x1a8] sm:$0xf] }
  0x55   :  { %1417 = vmatpush.bf16.msrb.mxu2 %v3215_v52  ;;  %1380 = vmatpush.bf16.msra.mxu0 %v2799_v3  ;;  %v3740_v49 = vld [vmem:[#allocation2 + $0x304] sm:$0xf]  ;;  %v2988_v54 = vld [vmem:[#allocation2 + $0x410] sm:$0xf0]  ;;  %v2735_v0 = vor.u32 %v3708_v44, %v2732_v46  ;;  %v3699_v38 = vld [vmem:[#allocation2 + $0x1b4] sm:$0xf0] }
  0x56   :  { %1393 = vmatpush.bf16.msra.mxu1 %v2927_v4  ;;  %v3772_v52 = vld [vmem:[#allocation2 + $0x404] sm:$0xf]  ;;  %v3244_v61 = vld [vmem:[#allocation2 + $0x610] sm:$0xf0]  ;;  %v2863_v1 = vor.u32 %v3740_v49, %v2860_v50  ;;  %v2546_v40 = vld [vmem:[#allocation2 + $0x88] sm:$0xf]  ;;  %v2691_v46 = vor.u32 %v3699_v38, %v2690_v37 }
  0x57   :  { %v3836_v59 = vld [vmem:[#allocation2 + $0x604] sm:$0xf]  ;;  %v3116_v3 = vld [vmem:[#allocation2 + $0x510] sm:$0xf0]  ;;  %v2991_v4 = vor.u32 %v3772_v52, %v2988_v54  ;;  %v3663_v41 = vld [vmem:[#allocation2 + $0x94] sm:$0xf0] }
  0x58   :  { %1406 = vmatpush.bf16.msra.mxu3 %v3055_v9  ;;  %v3247_v9 = vor.u32 %v3836_v59, %v3244_v61  ;;  %v2802_v43 = vld [vmem:[#allocation2 + $0x288] sm:$0xf]  ;;  %v3727_v44 = vld [vmem:[#allocation2 + $0x294] sm:$0xf0]  ;;  %v2547_v49 = vor.u32 %v3663_v41, %v2546_v40 }
  0x59   :  { %1418 = vmatpush.bf16.msrb.mxu2 %v3199_v2  ;;  %1381 = vmatpush.bf16.msra.mxu0 %v2783_v16  ;;  %v3804_v2 = vld [vmem:[#allocation2 + $0x504] sm:$0xf]  ;;  %v2979_v16 = vor.u32 %v3771_v8, %v2978_v6  ;;  %v2674_v50 = vld [vmem:[#allocation2 + $0x188] sm:$0xf]  ;;  %v3695_v52 = vld [vmem:[#allocation2 + $0x194] sm:$0xf0] }
  0x5a   :  { %1394 = vmatpush.bf16.msra.mxu1 %v2911_v17  ;;  %v3119_v13 = vor.u32 %v3804_v2, %v3116_v3  ;;  %v2834_v17 = vld [vmem:[#allocation2 + $0x2c8] sm:$0xf]  ;;  %v3659_v56 = vld [vmem:[#allocation2 + $0x74] sm:$0xf0]  ;;  %v2675_v61 = vor.u32 %v3695_v52, %v2674_v50 }
  0x5b   :  { %v2835_v25 = vor.u32 %v3735_v18, %v2834_v17  ;;  %v2530_v54 = vld [vmem:[#allocation2 + $0x68] sm:$0xf]  ;;  %v3755_v63 = vld [vmem:[#allocation2 + $0x374] sm:$0xf0] }
  0x5c   :  { %1407 = vmatpush.bf16.msra.mxu3 %v3039_v21  ;;  %v3767_v21 = vld [vmem:[#allocation2 + $0x3d4] sm:$0xf0]  ;;  %v2786_v59 = vld [vmem:[#allocation2 + $0x268] sm:$0xf] }
  0x5d   :  { %1419 = vmatpush.bf16.msrb.mxu2 %v3183_v15  ;;  %1382 = vmatpush.bf16.msra.mxu0 %v2767_v28  ;;  %v3671_v15 = vld [vmem:[#allocation2 + $0xd4] sm:$0xf0]  ;;  %v2963_v28 = vor.u32 %v3767_v21, %v2962_v20  ;;  %v2914_v62 = vld [vmem:[#allocation2 + $0x368] sm:$0xf] }
  0x5e   :  { %1395 = vmatpush.bf16.msra.mxu1 %v2895_v29  ;;  %v2579_v22 = vor.u32 %v3671_v15, %v2578_v14  ;;  %v2818_v29 = vld [vmem:[#allocation2 + $0x2a8] sm:$0xf]  ;;  %v3691_v2 = vld [vmem:[#allocation2 + $0x174] sm:$0xf0]  ;;  %v2915_v6 = vor.u32 %v3755_v63, %v2914_v62 }
  0x5f   :  { %v2819_v39 = vor.u32 %v3731_v31, %v2818_v29  ;;  %v2770_v8 = vld [vmem:[#allocation2 + $0x248] sm:$0xf]  ;;  %v3687_v15 = vld [vmem:[#allocation2 + $0x154] sm:$0xf0] }
  0x60   :  { %1408 = vmatpush.bf16.msra.mxu3 %v3023_v34  ;;  %v3763_v34 = vld [vmem:[#allocation2 + $0x3b4] sm:$0xf0]  ;;  %v2898_v11 = vld [vmem:[#allocation2 + $0x348] sm:$0xf] }
  0x61   :  { %1420 = vmatpush.bf16.msrb.mxu2 %v3167_v27  ;;  %1383 = vmatpush.bf16.msra.mxu0 %v2751_v47  ;;  %v3667_v27 = vld [vmem:[#allocation2 + $0xb4] sm:$0xf0]  ;;  %v2930_v47 = vld [vmem:[#allocation2 + $0x388] sm:$0xf] }
  0x62   :  { %1396 = vmatpush.bf16.msra.mxu1 %v2879_v48  ;;  %v2563_v36 = vor.u32 %v3667_v27, %v2562_v26  ;;  %v3759_v48 = vld [vmem:[#allocation2 + $0x394] sm:$0xf0]  ;;  %v2642_v14 = vld [vmem:[#allocation2 + $0x148] sm:$0xf] }
  0x63   :  { %v2931_v58 = vor.u32 %v3759_v48, %v2930_v47  ;;  %v2498_v17 = vld [vmem:[#allocation2 + $0x28] sm:$0xf]  ;;  %v3651_v18 = vld [vmem:[#allocation2 + $0x34] sm:$0xf0]  ;;  %v3673_v47 = vld [vmem:[#allocation2 + $0xec] sm:$0xf] }
  0x64   :  { %1409 = vmatpush.bf16.msra.mxu3 %v3007_v53  ;;  %v2803_v53 = vor.u32 %v3727_v44, %v2802_v43  ;;  %v2754_v20 = vld [vmem:[#allocation2 + $0x228] sm:$0xf]  ;;  %v3715_v21 = vld [vmem:[#allocation2 + $0x234] sm:$0xf0]  ;;  %v2596_v48 = vld [vmem:[#allocation2 + $0xf8] sm:$0xf0] }
  0x65   :  { %1421 = vmatpush.bf16.msrb.mxu2 %v3151_v42  ;;  %1384 = vmatpush.bf16.msra.mxu0 %v2735_v0  ;;  %v2947_v42 = vor.u32 %v3763_v34, %v2946_v33  ;;  %v2531_v0 = vor.u32 %v3659_v56, %v2530_v54  ;;  %v2882_v23 = vld [vmem:[#allocation2 + $0x328] sm:$0xf]  ;;  %v3747_v24 = vld [vmem:[#allocation2 + $0x334] sm:$0xf0]  ;;  %v2755_v29 = vor.u32 %v3715_v21, %v2754_v20 }
  0x66   :  { %1397 = vmatpush.bf16.msra.mxu1 %v2863_v1  ;;  %v2658_v1 = vld [vmem:[#allocation2 + $0x168] sm:$0xf]  ;;  %v3683_v27 = vld [vmem:[#allocation2 + $0x134] sm:$0xf0]  ;;  %v2883_v34 = vor.u32 %v3747_v24, %v2882_v23  ;;  %v2599_v63 = vor.u32 %v3673_v47, %v2596_v48  ;;  %v2692_v23 = vld [vmem:[#allocation2 + $0x1b8] sm:$0xf0] }
  0x67   :  { %v2659_v10 = vor.u32 %v3691_v2, %v2658_v1  ;;  %v2626_v26 = vld [vmem:[#allocation2 + $0x128] sm:$0xf]  ;;  %v3647_v31 = vld [vmem:[#allocation2 + $0x14] sm:$0xf0]  ;;  %v3669_v1 = vld [vmem:[#allocation2 + $0xcc] sm:$0xf] }
  0x68   :  { %1410 = vmatpush.bf16.msra.mxu3 %v2991_v4  ;;  %1385 = vmatmul.bf16.vlgmr.msra.gmra.mxu0 %v4071_v51  ;;  %v2514_v4 = vld [vmem:[#allocation2 + $0x48] sm:$0xf]  ;;  %v3803_v33 = vld [vmem:[#allocation2 + $0x4f4] sm:$0xf0]  ;;  %v2627_v40 = vor.u32 %v3683_v27, %v2626_v26  ;;  %v2580_v2 = vld [vmem:[#allocation2 + $0xd8] sm:$0xf0] }
  0x69   :  { %1422 = vmatpush.bf16.msrb.mxu2 %v3135_v60  ;;  %1468 = vmatpush.bf16.msrb.mxu0 %v2851_v12  ;;  %v3723_v60 = vld [vmem:[#allocation2 + $0x274] sm:$0xf0]  ;;  %v2738_v37 = vld [vmem:[#allocation2 + $0x208] sm:$0xf]  ;;  %v3661_v26 = vld [vmem:[#allocation2 + $0x8c] sm:$0xf] }
  0x6a   :  { %1442 = vmatpush.bf16.msrb.mxu1 %v2595_v5  ;;  %v2787_v3 = vor.u32 %v3723_v60, %v2786_v59  ;;  %v3655_v5 = vld [vmem:[#allocation2 + $0x54] sm:$0xf0]  ;;  %v3234_v52 = vld [vmem:[#allocation2 + $0x5e8] sm:$0xf]  ;;  %v3705_v60 = vld [vmem:[#allocation2 + $0x1ec] sm:$0xf] }
  0x6b   :  { %1411 = vmatmul.bf16.vlgmr.msra.gmra.mxu3 %v4099_v30  ;;  %1398 = vmatmul.bf16.vlgmr.msra.gmra.mxu1 %v4075_v57  ;;  %v3751_v12 = vld [vmem:[#allocation2 + $0x354] sm:$0xf0]  ;;  %v3090_v54 = vld [vmem:[#allocation2 + $0x4c8] sm:$0xf]  ;;  %v2548_v27 = vld [vmem:[#allocation2 + $0x98] sm:$0xf0] }
  0x6c   :  { %1436 = vmatpush.bf16.msrb.mxu3 %v3247_v9  ;;  %v3719_v9 = vld [vmem:[#allocation2 + $0x254] sm:$0xf0]  ;;  %v3058_v20 = vld [vmem:[#allocation2 + $0x488] sm:$0xf] }
  0x6d   :  { %1423 = vmatpush.bf16.msrb.mxu2 %v3119_v13  ;;  %1469 = vmatpush.bf16.msrb.mxu0 %v2835_v25  ;;  %v2515_v13 = vor.u32 %v3655_v5, %v2514_v4  ;;  %v2499_v25 = vor.u32 %v3651_v18, %v2498_v17  ;;  %v3711_v38 = vld [vmem:[#allocation2 + $0x214] sm:$0xf0]  ;;  %v3218_v5 = vld [vmem:[#allocation2 + $0x5c8] sm:$0xf] }
  0x6e   :  { %1443 = vmatpush.bf16.msrb.mxu1 %v2579_v22  ;;  %v2643_v22 = vor.u32 %v3687_v15, %v2642_v14  ;;  %v3743_v41 = vld [vmem:[#allocation2 + $0x314] sm:$0xf0]  ;;  %v2739_v50 = vor.u32 %v3711_v38, %v2738_v37  ;;  %v3665_v14 = vld [vmem:[#allocation2 + $0xac] sm:$0xf]  ;;  %v2564_v15 = vld [vmem:[#allocation2 + $0xb8] sm:$0xf0]  ;;  %v2551_v38 = vor.u32 %v3661_v26, %v2548_v27 }
  0x6f   :  { %v3839_v43 = vld [vmem:[#allocation2 + $0x614] sm:$0xf0]  ;;  %v3202_v18 = vld [vmem:[#allocation2 + $0x5a8] sm:$0xf]  ;;  %v2567_v24 = vor.u32 %v3665_v14, %v2564_v15  ;;  %v2676_v37 = vld [vmem:[#allocation2 + $0x198] sm:$0xf0] }
  0x70   :  { %1455 = vmatpush.bf16.msra.mxu3 %v2723_v19  ;;  %1424 = vmatmul.bf16.vlgmr.msrb.gmra.mxu2 %v4101_v35  ;;  %v2899_v19 = vor.u32 %v3751_v12, %v2898_v11  ;;  %v2708_v11 = vld [vmem:[#allocation2 + $0x1d8] sm:$0xf0]  ;;  %v2583_v12 = vor.u32 %v3669_v1, %v2580_v2  ;;  %v3791_v21 = vld [vmem:[#allocation2 + $0x494] sm:$0xf0]  ;;  %v3026_v47 = vld [vmem:[#allocation2 + $0x448] sm:$0xf] }
  0x71   :  { %1481 = vmatpush.bf16.msra.mxu2 %v2979_v16  ;;  %1470 = vmatpush.bf16.msrb.mxu0 %v2819_v39  ;;  %v2771_v16 = vor.u32 %v3719_v9, %v2770_v8  ;;  %v2866_v39 = vld [vmem:[#allocation2 + $0x308] sm:$0xf]  ;;  %v3795_v9 = vld [vmem:[#allocation2 + $0x4b4] sm:$0xf0]  ;;  %v2644_v1 = vld [vmem:[#allocation2 + $0x158] sm:$0xf0] }
  0x72   :  { %1444 = vmatpush.bf16.msrb.mxu1 %v2563_v36  ;;  %v2610_v36 = vld [vmem:[#allocation2 + $0x108] sm:$0xf]  ;;  %v2867_v56 = vor.u32 %v3743_v41, %v2866_v39  ;;  %v2532_v41 = vld [vmem:[#allocation2 + $0x78] sm:$0xf0]  ;;  %v3783_v48 = vld [vmem:[#allocation2 + $0x454] sm:$0xf0] }
  0x73   :  { %v3074_v8 = vld [vmem:[#allocation2 + $0x4a8] sm:$0xf]  ;;  %v2628_v14 = vld [vmem:[#allocation2 + $0x138] sm:$0xf0] }
  0x74   :  { %1456 = vmatpush.bf16.msra.mxu3 %v2707_v32  ;;  %v3106_v32 = vld [vmem:[#allocation2 + $0x4e8] sm:$0xf]  ;;  %v2980_v26 = vld [vmem:[#allocation2 + $0x3f8] sm:$0xf0] }
  0x75   :  { %1482 = vmatpush.bf16.msra.mxu2 %v2963_v28  ;;  %1471 = vmatpush.bf16.msrb.mxu0 %v2803_v53  ;;  %v2482_v28 = vld [vmem:[#allocation2 + $0x8] sm:$0xf]  ;;  %v3835_v53 = vld [vmem:[#allocation2 + $0x5f4] sm:$0xf0] }
  0x76   :  { %1445 = vmatpush.bf16.msrb.mxu1 %v2547_v49  ;;  %v2483_v44 = vor.u32 %v3647_v31, %v2482_v28  ;;  %v3107_v49 = vor.u32 %v3803_v33, %v3106_v32  ;;  %v3059_v28 = vor.u32 %v3791_v21, %v3058_v20  ;;  %v3186_v31 = vld [vmem:[#allocation2 + $0x588] sm:$0xf]  ;;  %v3823_v32 = vld [vmem:[#allocation2 + $0x594] sm:$0xf0]  ;;  %v3645_v20 = vld [vmem:[#allocation2 + $0xc] sm:$0xf] }
  0x77   :  { %v3042_v33 = vld [vmem:[#allocation2 + $0x468] sm:$0xf]  ;;  %v3187_v39 = vor.u32 %v3823_v32, %v3186_v31  ;;  %v2484_v21 = vld [vmem:[#allocation2 + $0x18] sm:$0xf0]  ;;  %v3733_v31 = vld [vmem:[#allocation2 + $0x2cc] sm:$0xf] }
  0x78   :  { %1457 = vmatpush.bf16.msra.mxu3 %v2691_v46  ;;  %v3679_v46 = vld [vmem:[#allocation2 + $0x114] sm:$0xf0]  ;;  %v2487_v32 = vor.u32 %v3645_v20, %v2484_v21  ;;  %v3753_v20 = vld [vmem:[#allocation2 + $0x36c] sm:$0xf] }
  0x79   :  { %1483 = vmatpush.bf16.msra.mxu2 %v2947_v42  ;;  %1472 = vmatpush.bf16.msrb.mxu0 %v2787_v3  ;;  %v3250_v42 = vld [vmem:[#allocation2 + $0x608] sm:$0xf]  ;;  %v2611_v62 = vor.u32 %v3679_v46, %v2610_v36  ;;  %v3693_v36 = vld [vmem:[#allocation2 + $0x18c] sm:$0xf]  ;;  %v3819_v46 = vld [vmem:[#allocation2 + $0x574] sm:$0xf0] }
  0x7a   :  { %1446 = vmatpush.bf16.msrb.mxu1 %v2531_v0  ;;  %v3251_v59 = vor.u32 %v3839_v43, %v3250_v42  ;;  %v3235_v0 = vor.u32 %v3835_v53, %v3234_v52  ;;  %v2679_v43 = vor.u32 %v3693_v36, %v2676_v37  ;;  %v2612_v36 = vld [vmem:[#allocation2 + $0x118] sm:$0xf0] }
  0x7b   :  { %3257 = vmatmul.msk.bf16.vlgmr.msrb.gmra.mxu3 %vm1256_vm0, %v4089_v45 }
  0x7c   :  { %1458 = vmatpush.bf16.msra.mxu3 %v2675_v61  ;;  %v2724_v61 = vld [vmem:[#allocation2 + $0x1f8] sm:$0xf0] }
  0x7d   :  { %1484 = vmatpush.bf16.msra.mxu2 %v2931_v58  ;;  %1473 = vmatpush.bf16.msrb.mxu0 %v2771_v16  ;;  %v3799_v58 = vld [vmem:[#allocation2 + $0x4d4] sm:$0xf0]  ;;  %v2727_v4 = vor.u32 %v3705_v60, %v2724_v61  ;;  %v3075_v16 = vor.u32 %v3795_v9, %v3074_v8  ;;  %v3154_v60 = vld [vmem:[#allocation2 + $0x548] sm:$0xf] }
  0x7e   :  { %1447 = vmatpush.bf16.msrb.mxu1 %v2515_v13  ;;  %v3091_v3 = vor.u32 %v3799_v58, %v3090_v54  ;;  %v3653_v54 = vld [vmem:[#allocation2 + $0x4c] sm:$0xf]  ;;  %v3027_v58 = vor.u32 %v3783_v48, %v3026_v47  ;;  %v3815_v61 = vld [vmem:[#allocation2 + $0x554] sm:$0xf0]  ;;  %v3138_v9 = vld [vmem:[#allocation2 + $0x528] sm:$0xf] }
  0x7f   :  { %v3797_v47 = vld [vmem:[#allocation2 + $0x4cc] sm:$0xf]  ;;  %v3092_v48 = vld [vmem:[#allocation2 + $0x4d8] sm:$0xf0] }
  0x80   :  { %1459 = vmatpush.bf16.msra.mxu3 %v2659_v10  ;;  %v3701_v10 = vld [vmem:[#allocation2 + $0x1cc] sm:$0xf] }
  0x81   :  { %1485 = vmatpush.bf16.msra.mxu2 %v2915_v6  ;;  %1474 = vmatpush.bf16.msrb.mxu0 %v2755_v29  ;;  %v3831_v6 = vld [vmem:[#allocation2 + $0x5d4] sm:$0xf0]  ;;  %v2711_v17 = vor.u32 %v3701_v10, %v2708_v11  ;;  %v2994_v11 = vld [vmem:[#allocation2 + $0x408] sm:$0xf] }
  0x82   :  { %1448 = vmatpush.bf16.msrb.mxu1 %v2499_v25  ;;  %v3219_v13 = vor.u32 %v3831_v6, %v3218_v5  ;;  %v2500_v5 = vld [vmem:[#allocation2 + $0x38] sm:$0xf0]  ;;  %v3811_v10 = vld [vmem:[#allocation2 + $0x534] sm:$0xf0] }
  0x84   :  { %1460 = vmatpush.bf16.msra.mxu3 %v2643_v22  ;;  %v3697_v22 = vld [vmem:[#allocation2 + $0x1ac] sm:$0xf] }
  0x85   :  { %1486 = vmatpush.bf16.msra.mxu2 %v2899_v19  ;;  %1475 = vmatpush.bf16.msrb.mxu0 %v2739_v50  ;;  %v3827_v19 = vld [vmem:[#allocation2 + $0x5b4] sm:$0xf0]  ;;  %v2695_v29 = vor.u32 %v3697_v22, %v2692_v23  ;;  %v2660_v50 = vld [vmem:[#allocation2 + $0x178] sm:$0xf0] }
  0x86   :  { %1449 = vmatpush.bf16.msrb.mxu1 %v2483_v44  ;;  %v3203_v25 = vor.u32 %v3827_v19, %v3202_v18  ;;  %v3170_v44 = vld [vmem:[#allocation2 + $0x568] sm:$0xf]  ;;  %v3139_v18 = vor.u32 %v3811_v10, %v3138_v9  ;;  %v2932_v10 = vld [vmem:[#allocation2 + $0x398] sm:$0xf0] }
  0x87   :  { %v3171_v53 = vor.u32 %v3819_v46, %v3170_v44  ;;  %v3122_v19 = vld [vmem:[#allocation2 + $0x508] sm:$0xf]  ;;  %v2964_v46 = vld [vmem:[#allocation2 + $0x3d8] sm:$0xf0] }
  0x88   :  { %1461 = vmatpush.bf16.msra.mxu3 %v2627_v40  ;;  %1476 = vmatmul.bf16.vlgmr.msrb.gmra.mxu0 %v4071_v51  ;;  %v3657_v40 = vld [vmem:[#allocation2 + $0x6c] sm:$0xf] }
  0x89   :  { %1487 = vmatpush.bf16.msra.mxu2 %v2883_v34  ;;  %1527 = vmatpush.bf16.msra.mxu0 %v3251_v59  ;;  %v3787_v34 = vld [vmem:[#allocation2 + $0x474] sm:$0xf0]  ;;  %v2535_v52 = vor.u32 %v3657_v40, %v2532_v41 }
  0x8a   :  { %1494 = vmatpush.bf16.msra.mxu1 %v3107_v49  ;;  %v3043_v42 = vor.u32 %v3787_v34, %v3042_v33  ;;  %v3689_v49 = vld [vmem:[#allocation2 + $0x16c] sm:$0xf]  ;;  %v2836_v33 = vld [vmem:[#allocation2 + $0x2d8] sm:$0xf0] }
  0x8b   :  { %1450 = vmatmul.bf16.vlgmr.msrb.gmra.mxu1 %v4073_v55  ;;  %v2663_v59 = vor.u32 %v3689_v49, %v2660_v50  ;;  %v3677_v34 = vld [vmem:[#allocation2 + $0x10c] sm:$0xf] }
  0x8c   :  { %1462 = vmatpush.bf16.msra.mxu3 %v2611_v62  ;;  %v3010_v62 = vld [vmem:[#allocation2 + $0x428] sm:$0xf]  ;;  %v2615_v44 = vor.u32 %v3677_v34, %v2612_v36  ;;  %v3729_v50 = vld [vmem:[#allocation2 + $0x2ac] sm:$0xf] }
  0x8d   :  { %1488 = vmatpush.bf16.msra.mxu2 %v2867_v56  ;;  %1546 = vmatpush.bf16.msrb.mxu0 %v2727_v4  ;;  %v2516_v56 = vld [vmem:[#allocation2 + $0x58] sm:$0xf0]  ;;  %v3649_v4 = vld [vmem:[#allocation2 + $0x2c] sm:$0xf] }
  0x8e   :  { %1495 = vmatpush.bf16.msra.mxu1 %v3091_v3  ;;  %v2519_v2 = vor.u32 %v3653_v54, %v2516_v56  ;;  %v3155_v3 = vor.u32 %v3815_v61, %v3154_v60  ;;  %v2503_v15 = vor.u32 %v3649_v4, %v2500_v5  ;;  %v3220_v54 = vld [vmem:[#allocation2 + $0x5d8] sm:$0xf0]  ;;  %v3749_v34 = vld [vmem:[#allocation2 + $0x34c] sm:$0xf] }
  0x8f   :  { %1463 = vmatmul.bf16.vlgmr.msra.gmra.mxu3 %v4082_v7  ;;  %v2948_v61 = vld [vmem:[#allocation2 + $0x3b8] sm:$0xf0] }
  0x90   :  { %1507 = vmatpush.bf16.msrb.mxu3 %v3235_v0  ;;  %1489 = vmatmul.bf16.vlgmr.msra.gmra.mxu2 %v4075_v57  ;;  %v3685_v0 = vld [vmem:[#allocation2 + $0x14c] sm:$0xf]  ;;  %v3204_v4 = vld [vmem:[#allocation2 + $0x5b8] sm:$0xf0] }
  0x91   :  { %1533 = vmatpush.bf16.msrb.mxu2 %v2599_v63  ;;  %1547 = vmatpush.bf16.msrb.mxu0 %v2711_v17  ;;  %v3779_v63 = vld [vmem:[#allocation2 + $0x434] sm:$0xf0]  ;;  %v2647_v8 = vor.u32 %v3685_v0, %v2644_v1  ;;  %v2852_v17 = vld [vmem:[#allocation2 + $0x2f8] sm:$0xf0]  ;;  %v3725_v1 = vld [vmem:[#allocation2 + $0x28c] sm:$0xf] }
  0x92   :  { %1496 = vmatpush.bf16.msra.mxu1 %v3075_v16  ;;  %v3011_v6 = vor.u32 %v3779_v63, %v3010_v62  ;;  %v3737_v16 = vld [vmem:[#allocation2 + $0x2ec] sm:$0xf]  ;;  %v3076_v63 = vld [vmem:[#allocation2 + $0x4b8] sm:$0xf0] }
  0x93   :  { %v2855_v27 = vor.u32 %v3737_v16, %v2852_v17  ;;  %v3793_v62 = vld [vmem:[#allocation2 + $0x4ac] sm:$0xf]  ;;  %v3188_v17 = vld [vmem:[#allocation2 + $0x598] sm:$0xf0] }
  0x94   :  { %1508 = vmatpush.bf16.msrb.mxu3 %v3219_v13  ;;  %v3681_v13 = vld [vmem:[#allocation2 + $0x12c] sm:$0xf] }
  0x95   :  { %1534 = vmatpush.bf16.msrb.mxu2 %v2583_v12  ;;  %1548 = vmatpush.bf16.msrb.mxu0 %v2695_v29  ;;  %v3775_v12 = vld [vmem:[#allocation2 + $0x414] sm:$0xf0]  ;;  %v2631_v23 = vor.u32 %v3681_v13, %v2628_v14  ;;  %v3108_v29 = vld [vmem:[#allocation2 + $0x4f8] sm:$0xf0]  ;;  %v3721_v14 = vld [vmem:[#allocation2 + $0x26c] sm:$0xf] }
  0x96   :  { %1497 = vmatpush.bf16.msra.mxu1 %v3059_v28  ;;  %v2995_v22 = vor.u32 %v3775_v12, %v2994_v11  ;;  %v3801_v28 = vld [vmem:[#allocation2 + $0x4ec] sm:$0xf]  ;;  %v3060_v12 = vld [vmem:[#allocation2 + $0x498] sm:$0xf0] }
  0x97   :  { %v3111_v41 = vor.u32 %v3801_v28, %v3108_v29  ;;  %v3789_v11 = vld [vmem:[#allocation2 + $0x48c] sm:$0xf]  ;;  %v3172_v29 = vld [vmem:[#allocation2 + $0x578] sm:$0xf0] }
  0x98   :  { %1509 = vmatpush.bf16.msrb.mxu3 %v3203_v25  ;;  %3258 = vmatmul.msk.bf16.vlgmr.msra.gmra.mxu0 %vm1256_vm0, %v4089_v45  ;;  %v3769_v25 = vld [vmem:[#allocation2 + $0x3ec] sm:$0xf] }
  0x99   :  { %1535 = vmatpush.bf16.msrb.mxu2 %v2567_v24  ;;  %1549 = vmatpush.bf16.msrb.mxu0 %v2679_v43  ;;  %v3807_v24 = vld [vmem:[#allocation2 + $0x514] sm:$0xf0]  ;;  %v2983_v40 = vor.u32 %v3769_v25, %v2980_v26  ;;  %v2839_v43 = vor.u32 %v3733_v31, %v2836_v33  ;;  %v3717_v26 = vld [vmem:[#allocation2 + $0x24c] sm:$0xf] }
  0x9a   :  { %1498 = vmatpush.bf16.msra.mxu1 %v3043_v42  ;;  %v3123_v37 = vor.u32 %v3807_v24, %v3122_v19  ;;  %v3765_v42 = vld [vmem:[#allocation2 + $0x3cc] sm:$0xf]  ;;  %v3063_v19 = vor.u32 %v3789_v11, %v3060_v12  ;;  %v3044_v24 = vld [vmem:[#allocation2 + $0x478] sm:$0xf0] }
  0x9b   :  { %v2967_v56 = vor.u32 %v3765_v42, %v2964_v46  ;;  %v3817_v28 = vld [vmem:[#allocation2 + $0x56c] sm:$0xf]  ;;  %v2996_v11 = vld [vmem:[#allocation2 + $0x418] sm:$0xf0] }
  0x9c   :  { %1510 = vmatpush.bf16.msrb.mxu3 %v3187_v39  ;;  %v3236_v39 = vld [vmem:[#allocation2 + $0x5f8] sm:$0xf0]  ;;  %v3713_v42 = vld [vmem:[#allocation2 + $0x22c] sm:$0xf] }
  0x9d   :  { %1536 = vmatpush.bf16.msrb.mxu2 %v2551_v38  ;;  %1550 = vmatpush.bf16.msrb.mxu0 %v2663_v59  ;;  %v3833_v38 = vld [vmem:[#allocation2 + $0x5ec] sm:$0xf] }
  0x9e   :  { %1499 = vmatpush.bf16.msra.mxu1 %v3027_v58  ;;  %v3239_v49 = vor.u32 %v3833_v38, %v3236_v39  ;;  %v3095_v58 = vor.u32 %v3797_v47, %v3092_v48  ;;  %v3761_v59 = vld [vmem:[#allocation2 + $0x3ac] sm:$0xf]  ;;  %v2900_v38 = vld [vmem:[#allocation2 + $0x358] sm:$0xf0] }
  0x9f   :  { %v2951_v5 = vor.u32 %v3761_v59, %v2948_v61  ;;  %v3781_v39 = vld [vmem:[#allocation2 + $0x44c] sm:$0xf]  ;;  %v3156_v47 = vld [vmem:[#allocation2 + $0x558] sm:$0xf0]  ;;  %v2903_v48 = vor.u32 %v3749_v34, %v2900_v38  ;;  %v3302_v38 = vld [vmem:[%s4661_s3 + $0x50] sm:$0xf] }
  0xa0   :  { %1511 = vmatpush.bf16.msrb.mxu3 %v3171_v53  ;;  %v3829_v53 = vld [vmem:[#allocation2 + $0x5cc] sm:$0xf] }
  0xa1   :  { %1537 = vmatpush.bf16.msrb.mxu2 %v2535_v52  ;;  %1551 = vmatpush.bf16.msrb.mxu0 %v2647_v8  ;;  %v2820_v52 = vld [vmem:[#allocation2 + $0x2b8] sm:$0xf0]  ;;  %v3223_v0 = vor.u32 %v3829_v53, %v3220_v54  ;;  %v3757_v8 = vld [vmem:[#allocation2 + $0x38c] sm:$0xf] }
  0xa2   :  { %1500 = vmatpush.bf16.msra.mxu1 %v3011_v6  ;;  %v2823_v60 = vor.u32 %v3729_v50, %v2820_v52  ;;  %v3079_v6 = vor.u32 %v3793_v62, %v3076_v63  ;;  %v3813_v46 = vld [vmem:[#allocation2 + $0x54c] sm:$0xf]  ;;  %v2884_v53 = vld [vmem:[#allocation2 + $0x338] sm:$0xf0] }
  0xa3   :  { %v3745_v50 = vld [vmem:[#allocation2 + $0x32c] sm:$0xf]  ;;  %v3140_v63 = vld [vmem:[#allocation2 + $0x538] sm:$0xf0] }
  0xa4   :  { %1512 = vmatpush.bf16.msrb.mxu3 %v3155_v3  ;;  %v3825_v3 = vld [vmem:[#allocation2 + $0x5ac] sm:$0xf] }
  0xa5   :  { %1538 = vmatpush.bf16.msrb.mxu2 %v2519_v2  ;;  %1552 = vmatpush.bf16.msrb.mxu0 %v2631_v23  ;;  %v2804_v2 = vld [vmem:[#allocation2 + $0x298] sm:$0xf0]  ;;  %v3207_v13 = vor.u32 %v3825_v3, %v3204_v4  ;;  %v3785_v23 = vld [vmem:[#allocation2 + $0x46c] sm:$0xf]  ;;  %v2887_v4 = vor.u32 %v3745_v50, %v2884_v53  ;;  %v3286_v50 = vld [vmem:[%s4661_s3 + $0x30] sm:$0xf] }
  0xa6   :  { %1501 = vmatpush.bf16.msra.mxu1 %v2995_v22  ;;  %v2807_v9 = vor.u32 %v3725_v1, %v2804_v2  ;;  %v2916_v22 = vld [vmem:[#allocation2 + $0x378] sm:$0xf0]  ;;  %v4125_v25 = vpop.f32.mrf.mxu1  ;;  %v3047_v33 = vor.u32 %v3785_v23, %v3044_v24  ;;  %v3777_v54 = vld [vmem:[#allocation2 + $0x42c] sm:$0xf]  ;;  %v4134_v2 = vld [vmem:[%s4660_s2] sm:$0xf] }
  0xa7   :  { %v3709_v59 = vld [vmem:[#allocation2 + $0x20c] sm:$0xf]  ;;  %v3252_v1 = vld [vmem:[#allocation2 + $0x618] sm:$0xf0] }
  0xa8   :  { %1513 = vmatpush.bf16.msrb.mxu3 %v3139_v18  ;;  %v2935_v18 = vor.u32 %v3757_v8, %v2932_v10  ;;  %v3809_v61 = vld [vmem:[#allocation2 + $0x52c] sm:$0xf] }
  0xa9   :  { %1539 = vmatpush.bf16.msrb.mxu2 %v2503_v15  ;;  %1502 = vmatmul.bf16.vlgmr.msra.gmra.mxu1 %v4099_v30  ;;  %v2788_v15 = vld [vmem:[#allocation2 + $0x278] sm:$0xf0]  ;;  %v4123_v16 = vpop.f32.mrf.mxu0  ;;  %v3773_v10 = vld [vmem:[#allocation2 + $0x40c] sm:$0xf] }
  0xaa   :  { %1559 = vmatpush.bf16.msrb.mxu1 %v2855_v27  ;;  %1553 = vmatpush.bf16.msrb.mxu0 %v2615_v44  ;;  %v2791_v21 = vor.u32 %v3721_v14, %v2788_v15  ;;  %v2772_v27 = vld [vmem:[#allocation2 + $0x258] sm:$0xf0]  ;;  %v3318_v15 = vld [vmem:[%s4661_s3 + $0x70] sm:$0xf]  ;;  %v2999_v23 = vor.u32 %v3773_v10, %v2996_v11  ;;  %v3859_v11 = vld [vmem:[%s4661_s3 + $0x94] sm:$0xf0] }
  0xab   :  { %v2775_v36 = vor.u32 %v3717_v26, %v2772_v27  ;;  %v3310_v26 = vld [vmem:[%s4661_s3 + $0x60] sm:$0xf]  ;;  %v3853_v27 = vld [vmem:[%s4661_s3 + $0x64] sm:$0xf0] }
  0xac   :  { %1514 = vmatpush.bf16.msrb.mxu3 %v3123_v37 }
  0xad   :  { %1540 = vmatpush.bf16.msrb.mxu2 %v2487_v32  ;;  %1554 = vmatmul.bf16.vlgmr.msrb.gmra.mxu0 %v4082_v7  ;;  %v2919_v32 = vor.u32 %v3753_v20, %v2916_v22  ;;  %v3871_v20 = vld [vmem:[%s4661_s3 + $0xf4] sm:$0xf0] }
  0xae   :  { %1560 = vmatpush.bf16.msrb.mxu1 %v2839_v43  ;;  %1598 = vmatpush.bf16.msra.mxu0 %v3239_v49  ;;  %v4127_v31 = vpop.f32.mrf.mxu2  ;;  %v4129_v37 = vpop.f32.mrf.mxu3  ;;  %v2756_v43 = vld [vmem:[#allocation2 + $0x238] sm:$0xf0] }
  0xaf   :  { %1515 = vmatmul.bf16.vlgmr.msrb.gmra.mxu3 %v4101_v35  ;;  %v2759_v52 = vor.u32 %v3713_v42, %v2756_v43  ;;  %v1284_v62 = vpop.f32.mrf.mxu1  ;;  %v3849_v43 = vld [vmem:[%s4661_s3 + $0x44] sm:$0xf0] }
  0xb0   :  { %1572 = vmatpush.bf16.msra.mxu3 %v2983_v40  ;;  %1541 = vmatmul.bf16.vlgmr.msrb.gmra.mxu2 %v4073_v55  ;;  %v3821_v55 = vld [vmem:[#allocation2 + $0x58c] sm:$0xf]  ;;  %v3028_v40 = vld [vmem:[#allocation2 + $0x458] sm:$0xf0] }
  0xb1   :  { %1585 = vmatpush.bf16.msra.mxu2 %v3111_v41  ;;  %v3191_v7 = vor.u32 %v3821_v55, %v3188_v17  ;;  %v3175_v41 = vor.u32 %v3817_v28, %v3172_v29  ;;  %v1271_v44 = vpop.f32.mrf.mxu0  ;;  %v3031_v49 = vor.u32 %v3781_v39, %v3028_v40  ;;  %v3855_v55 = vld [vmem:[%s4661_s3 + $0x74] sm:$0xf0]  ;;  %v3805_v17 = vld [vmem:[#allocation2 + $0x50c] sm:$0xf]  ;;  %v3374_v29 = vld [vmem:[%s4661_s3 + $0xe0] sm:$0xf] }
  0xb2   :  { %1561 = vmatpush.bf16.msrb.mxu1 %v2823_v60  ;;  %1599 = vmatpush.bf16.msra.mxu0 %v3223_v0  ;;  %v2740_v60 = vld [vmem:[#allocation2 + $0x218] sm:$0xf0]  ;;  %v3837_v0 = vld [vmem:[#allocation2 + $0x60c] sm:$0xf]  ;;  %v3319_v24 = vor.u32 %v3855_v55, %v3318_v15  ;;  %v3851_v39 = vld [vmem:[%s4661_s3 + $0x54] sm:$0xf0] }
  0xb3   :  { %v2743_v8 = vor.u32 %v3709_v59, %v2740_v60  ;;  %v3255_v14 = vor.u32 %v3837_v0, %v3252_v1  ;;  %v3303_v42 = vor.u32 %v3851_v39, %v3302_v38  ;;  %v3278_v60 = vld [vmem:[%s4661_s3 + $0x20] sm:$0xf]  ;;  %v3861_v1 = vld [vmem:[%s4661_s3 + $0xa4] sm:$0xf0]  ;;  %v3854_v55 = vld [vmem:[%s4661_s3 + $0x74] sm:$0xf] }
  0xb4   :  { %1573 = vmatpush.bf16.msra.mxu3 %v2967_v56  ;;  %v3012_v56 = vld [vmem:[#allocation2 + $0x438] sm:$0xf0]  ;;  %v3841_v15 = vld [vmem:[%s4661_s3 + $0x4] sm:$0xf0] }
  0xb5   :  { %1586 = vmatpush.bf16.msra.mxu2 %v3095_v58  ;;  %v3159_v58 = vor.u32 %v3813_v46, %v3156_v47 }
  0xb6   :  { %1562 = vmatpush.bf16.msrb.mxu1 %v2807_v9  ;;  %1600 = vmatpush.bf16.msra.mxu0 %v3207_v13  ;;  %v1297_v3 = vpop.f32.mrf.mxu2  ;;  %v2868_v9 = vld [vmem:[#allocation2 + $0x318] sm:$0xf0]  ;;  %v1310_v12 = vpop.f32.mrf.mxu3  ;;  %v3143_v13 = vor.u32 %v3809_v61, %v3140_v63  ;;  %v3845_v61 = vld [vmem:[%s4661_s3 + $0x24] sm:$0xf0] }
  0xb8   :  { %1574 = vmatpush.bf16.msra.mxu3 %v2951_v5  ;;  %v3015_v5 = vor.u32 %v3777_v54, %v3012_v56  ;;  %v3350_v54 = vld [vmem:[%s4661_s3 + $0xb0] sm:$0xf] }
  0xb9   :  { %1587 = vmatpush.bf16.msra.mxu2 %v3079_v6  ;;  %v3741_v6 = vld [vmem:[#allocation2 + $0x30c] sm:$0xf] }
  0xba   :  { %1563 = vmatpush.bf16.msrb.mxu1 %v2791_v21  ;;  %1601 = vmatpush.bf16.msra.mxu0 %v3191_v7  ;;  %v268_v21 = vperm.slane %v4134_v2, 0  ;;  %v2871_v22 = vor.u32 %v3741_v6, %v2868_v9  ;;  %v3843_v9 = vld [vmem:[%s4661_s3 + $0x14] sm:$0xf0] }
  0xbc   :  { %1575 = vmatpush.bf16.msra.mxu3 %v2935_v18  ;;  %v3124_v18 = vld [vmem:[#allocation2 + $0x518] sm:$0xf0] }
  0xbd   :  { %1588 = vmatpush.bf16.msra.mxu2 %v3063_v19  ;;  %v3382_v19 = vld [vmem:[%s4661_s3 + $0xf0] sm:$0xf]  ;;  %v3127_v7 = vor.u32 %v3805_v17, %v3124_v18 }
  0xbe   :  { %1564 = vmatpush.bf16.msrb.mxu1 %v2775_v36  ;;  %1602 = vmatpush.bf16.msra.mxu0 %v3175_v41  ;;  %v3383_v28 = vor.u32 %v3871_v20, %v3382_v19  ;;  %v1347_v34 = vpop.f32.mrf.mxu2  ;;  %v3311_v36 = vor.u32 %v3853_v27, %v3310_v26  ;;  %v3320_v19 = vld [vmem:[%s4661_s3 + $0x78] sm:$0xf0]  ;;  %v3326_v20 = vld [vmem:[%s4661_s3 + $0x80] sm:$0xf] }
  0xbf   :  { %v3323_v27 = vor.u32 %v3854_v55, %v3320_v19  ;;  %v3272_v55 = vld [vmem:[%s4661_s3 + $0x18] sm:$0xf0]  ;;  %v3858_v19 = vld [vmem:[%s4661_s3 + $0x94] sm:$0xf] }
  0xc0   :  { %1576 = vmatpush.bf16.msra.mxu3 %v2919_v32  ;;  %v3869_v32 = vld [vmem:[%s4661_s3 + $0xe4] sm:$0xf0] }
  0xc1   :  { %1589 = vmatpush.bf16.msra.mxu2 %v3047_v33  ;;  %v1270_v33 = vadd.f32 %v4123_v16, %v268_v21  ;;  %v3375_v40 = vor.u32 %v3869_v32, %v3374_v29  ;;  %v3867_v16 = vld [vmem:[%s4661_s3 + $0xd4] sm:$0xf0]  ;;  %v3857_v21 = vld [vmem:[%s4661_s3 + $0x84] sm:$0xf0]  ;;  %v3852_v29 = vld [vmem:[%s4661_s3 + $0x64] sm:$0xf] }
  0xc2   :  { %1565 = vmatpush.bf16.msrb.mxu1 %v2759_v52  ;;  %1603 = vmatpush.bf16.msra.mxu0 %v3159_v58  ;;  %v3847_v52 = vld [vmem:[%s4661_s3 + $0x34] sm:$0xf0]  ;;  %v3312_v32 = vld [vmem:[%s4661_s3 + $0x68] sm:$0xf0] }
  0xc3   :  { %v1283_v41 = vadd.f32 %v4125_v25, %v1270_v33  ;;  %v3358_v25 = vld [vmem:[%s4661_s3 + $0xc0] sm:$0xf]  ;;  %v3287_v58 = vor.u32 %v3847_v52, %v3286_v50  ;;  %v3315_v39 = vor.u32 %v3852_v29, %v3312_v32  ;;  %v3885_v52 = vld [vmem:[%s4661_s3 + $0x164] sm:$0xf0]  ;;  %v3414_v29 = vld [vmem:[%s4661_s3 + $0x130] sm:$0xf] }
  0xc4   :  { %1577 = vmatpush.bf16.msra.mxu3 %v2903_v48  ;;  %v3438_v50 = vld [vmem:[%s4661_s3 + $0x160] sm:$0xf]  ;;  %v3879_v32 = vld [vmem:[%s4661_s3 + $0x134] sm:$0xf0] }
  0xc5   :  { %1590 = vmatpush.bf16.msra.mxu2 %v3031_v49  ;;  %v1321_v46 = vpop.f32.mrf.mxu0 }
  0xc6   :  { %1566 = vmatpush.bf16.msrb.mxu1 %v2743_v8  ;;  %1604 = vmatpush.bf16.msra.mxu0 %v3143_v13  ;;  %v1349_v48 = vpop.f32.mrf.mxu2  ;;  %v3270_v8 = vld [vmem:[%s4661_s3 + $0x10] sm:$0xf] }
  0xc7   :  { %v3271_v12 = vor.u32 %v3843_v9, %v3270_v8  ;;  %v3430_v9 = vld [vmem:[%s4661_s3 + $0x150] sm:$0xf] }
  0xc8   :  { %1578 = vmatpush.bf16.msra.mxu3 %v2887_v4  ;;  %v1334_v47 = vpop.f32.mrf.mxu1  ;;  %v3279_v4 = vor.u32 %v3845_v61, %v3278_v60  ;;  %v3439_v60 = vor.u32 %v3885_v52, %v3438_v50  ;;  %v3862_v61 = vld [vmem:[%s4661_s3 + $0xb4] sm:$0xf]  ;;  %v3873_v50 = vld [vmem:[%s4661_s3 + $0x104] sm:$0xf0] }
  0xc9   :  { %1591 = vmatpush.bf16.msra.mxu2 %v3015_v5  ;;  %1567 = vmatmul.bf16.vlgmr.msrb.gmra.mxu1 %v4071_v51  ;;  %v3366_v51 = vld [vmem:[%s4661_s3 + $0xd0] sm:$0xf] }
  0xca   :  { %1618 = vmatpush.bf16.msra.mxu1 %v3255_v14  ;;  %1605 = vmatpush.bf16.msra.mxu0 %v3127_v7  ;;  %v3367_v44 = vor.u32 %v3867_v16, %v3366_v51  ;;  %v3262_v14 = vld [vmem:[%s4661_s3] sm:$0xf]  ;;  %v3304_v51 = vld [vmem:[%s4661_s3 + $0x58] sm:$0xf0] }
  0xcc   :  { %1579 = vmatpush.bf16.msra.mxu3 %v2871_v22  ;;  %v3870_v22 = vld [vmem:[%s4661_s3 + $0xf4] sm:$0xf] }
  0xcd   :  { %1592 = vmatpush.bf16.msra.mxu2 %v2999_v23  ;;  %1606 = vmatmul.bf16.vlgmr.msra.gmra.mxu0 %v4101_v35  ;;  %v1296_v35 = vadd.f32 %v4127_v31, %v1283_v41  ;;  %v3863_v31 = vld [vmem:[%s4661_s3 + $0xb4] sm:$0xf0]  ;;  %v1323_v0 = vpop.f32.mrf.mxu0  ;;  %v3384_v23 = vld [vmem:[%s4661_s3 + $0xf8] sm:$0xf0]  ;;  %v3866_v41 = vld [vmem:[%s4661_s3 + $0xd4] sm:$0xf] }
  0xce   :  { %2035 = vmatpush.bf16.msrb.mxu1 %v3383_v28  ;;  %v3351_v62 = vor.u32 %v3863_v31, %v3350_v54  ;;  %v4211_v63 = vpop.f32.mrf.mxu3  ;;  %v3327_v28 = vor.u32 %v3857_v21, %v3326_v20  ;;  %v3387_v33 = vor.u32 %v3870_v22, %v3384_v23  ;;  %v269_v54 = vperm.slane %v4134_v2, 1  ;;  %v3422_v20 = vld [vmem:[%s4661_s3 + $0x140] sm:$0xf]  ;;  %v3881_v21 = vld [vmem:[%s4661_s3 + $0x144] sm:$0xf0] }
  0xcf   :  { %1580 = vmatmul.bf16.vlgmr.msra.gmra.mxu3 %v4075_v57  ;;  %v3294_v57 = vld [vmem:[%s4661_s3 + $0x40] sm:$0xf]  ;;  %v1309_v56 = vadd.f32 %v4129_v37, %v1296_v35  ;;  %v3446_v35 = vld [vmem:[%s4661_s3 + $0x170] sm:$0xf]  ;;  %v3423_v23 = vor.u32 %v3881_v21, %v3422_v20 }
  0xd0   :  { %2022 = vmatpush.bf16.msrb.mxu3 %v3319_v24  ;;  %1593 = vmatmul.bf16.vlgmr.msra.gmra.mxu2 %v4099_v30  ;;  %v3865_v30 = vld [vmem:[%s4661_s3 + $0xc4] sm:$0xf0]  ;;  %v3295_v49 = vor.u32 %v3849_v43, %v3294_v57  ;;  %v3342_v37 = vld [vmem:[%s4661_s3 + $0xa0] sm:$0xf]  ;;  %v1336_v3 = vpop.f32.mrf.mxu1  ;;  %v3263_v24 = vor.u32 %v3841_v15, %v3262_v14  ;;  %v3848_v43 = vld [vmem:[%s4661_s3 + $0x44] sm:$0xf] }
  0xd1   :  { %v3359_v53 = vor.u32 %v3865_v30, %v3358_v25  ;;  %v1322_v59 = vadd.f32 %v1321_v46, %v1309_v56  ;;  %v3343_v10 = vor.u32 %v3861_v1, %v3342_v37  ;;  %v3864_v25 = vld [vmem:[%s4661_s3 + $0xc4] sm:$0xf]  ;;  %v3360_v30 = vld [vmem:[%s4661_s3 + $0xc8] sm:$0xf0]  ;;  %v3846_v56 = vld [vmem:[%s4661_s3 + $0x34] sm:$0xf]  ;;  %v1361_v37 = vadd.f32 %v4211_v63, %v269_v54 }
  0xd2   :  { %2036 = vmatpush.bf16.msrb.mxu1 %v3375_v40  ;;  %v3850_v40 = vld [vmem:[%s4661_s3 + $0x54] sm:$0xf]  ;;  %v3844_v1 = vld [vmem:[%s4661_s3 + $0x24] sm:$0xf]  ;;  %v3280_v3 = vld [vmem:[%s4661_s3 + $0x28] sm:$0xf0] }
  0xd3   :  { %v4221_v5 = vpop.f32.mrf.mxu2  ;;  %v1335_v6 = vadd.f32 %v1334_v47, %v1322_v59  ;;  %v3307_v57 = vor.u32 %v3850_v40, %v3304_v51  ;;  %v3887_v47 = vld [vmem:[%s4661_s3 + $0x174] sm:$0xf0]  ;;  %v3363_v59 = vor.u32 %v3864_v25, %v3360_v30  ;;  %v3344_v63 = vld [vmem:[%s4661_s3 + $0xa8] sm:$0xf0]  ;;  %v3842_v15 = vld [vmem:[%s4661_s3 + $0x14] sm:$0xf] }
  0xd4   :  { %2023 = vmatpush.bf16.msrb.mxu3 %v3311_v36  ;;  %v3376_v36 = vld [vmem:[%s4661_s3 + $0xe8] sm:$0xf0]  ;;  %v1374_v14 = vadd.f32 %v4221_v5, %v1361_v37  ;;  %v3336_v5 = vld [vmem:[%s4661_s3 + $0x98] sm:$0xf0]  ;;  %v3877_v40 = vld [vmem:[%s4661_s3 + $0x124] sm:$0xf0] }
  0xd5   :  { %v1348_v13 = vadd.f32 %v1347_v34, %v1335_v6  ;;  %v3868_v34 = vld [vmem:[%s4661_s3 + $0xe4] sm:$0xf]  ;;  %v3886_v54 = vld [vmem:[%s4661_s3 + $0x174] sm:$0xf]  ;;  %v3486_v21 = vld [vmem:[%s4661_s3 + $0x1c0] sm:$0xf] }
  0xd6   :  { %2037 = vmatpush.bf16.msrb.mxu1 %v3367_v44  ;;  %v1362_v18 = vpop.f32.mrf.mxu3  ;;  %v3379_v16 = vor.u32 %v3868_v34, %v3376_v36  ;;  %v3296_v44 = vld [vmem:[%s4661_s3 + $0x48] sm:$0xf0]  ;;  %v3860_v6 = vld [vmem:[%s4661_s3 + $0xa4] sm:$0xf]  ;;  %v3415_v36 = vor.u32 %v3879_v32, %v3414_v29 }
  0xd7   :  { %v1624_v26 = vmax.f32 %v1348_v13, 0.0  ;;  %v3283_v13 = vor.u32 %v3844_v1, %v3280_v3  ;;  %v3347_v18 = vor.u32 %v3860_v6, %v3344_v63  ;;  %v3328_v34 = vld [vmem:[%s4661_s3 + $0x88] sm:$0xf0]  ;;  %v3882_v3 = vld [vmem:[%s4661_s3 + $0x154] sm:$0xf] }
  0xd8   :  { %2024 = vmatpush.bf16.msrb.mxu3 %v3303_v42  ;;  %v3368_v42 = vld [vmem:[%s4661_s3 + $0xd8] sm:$0xf0]  ;;  %v3901_v63 = vld [vmem:[%s4661_s3 + $0x1e4] sm:$0xf0] }
  0xd9   :  { %3259 = vmatmul.msk.bf16.vlgmr.msra.gmra.mxu1 %vm1256_vm0, %v4089_v45  ;;  %v3334_v45 = vld [vmem:[%s4661_s3 + $0x90] sm:$0xf]  ;;  %v4271_v38 = vpack.c.bf16 %v1624_v26, %v1624_v26  ;;  %v3371_v46 = vor.u32 %v3866_v41, %v3368_v42  ;;  %v3264_v26 = vld [vmem:[%s4661_s3 + $0x8] sm:$0xf0] }
  0xda   :  { %2038 = vmatpush.bf16.msrb.mxu1 %v3359_v53  ;;  %v3335_v17 = vor.u32 %v3859_v11, %v3334_v45  ;;  %v3299_v53 = vor.u32 %v3848_v43, %v3296_v44  ;;  %v3398_v44 = vld [vmem:[%s4661_s3 + $0x110] sm:$0xf] }
  0xdb   :  { %v1375_v7 = vpop.f32.mrf.mxu2 }
  0xdc   :  { %2025 = vmatpush.bf16.msrb.mxu3 %v3295_v49  ;;  %v3447_v49 = vor.u32 %v3887_v47, %v3446_v35  ;;  %v3840_v7 = vld [vmem:[%s4661_s3 + $0x4] sm:$0xf] }
  0xde   :  { %2039 = vmatpush.bf16.msrb.mxu1 %v3351_v62  ;;  %2048 = vmatpush.bf16.msrb.mxu2 %v3447_v49  ;;  %v3352_v62 = vld [vmem:[%s4661_s3 + $0xb8] sm:$0xf0]  ;;  %v3390_v49 = vld [vmem:[%s4661_s3 + $0x100] sm:$0xf] }
  0xe0   :  { %2026 = vmatpush.bf16.msrb.mxu3 %v3287_v58  ;;  %v3288_v58 = vld [vmem:[%s4661_s3 + $0x38] sm:$0xf0] }
  0xe1   :  { %v3291_v0 = vor.u32 %v3846_v56, %v3288_v58  ;;  %v3440_v58 = vld [vmem:[%s4661_s3 + $0x168] sm:$0xf0] }
  0xe2   :  { %2040 = vmatpush.bf16.msrb.mxu1 %v3343_v10  ;;  %2049 = vmatpush.bf16.msrb.mxu2 %v3439_v60  ;;  %v3883_v10 = vld [vmem:[%s4661_s3 + $0x154] sm:$0xf0] }
  0xe3   :  { %v3431_v11 = vor.u32 %v3883_v10, %v3430_v9  ;;  %v3903_v60 = vld [vmem:[%s4661_s3 + $0x1f4] sm:$0xf0] }
  0xe4   :  { %2027 = vmatpush.bf16.msrb.mxu3 %v3279_v4  ;;  %v3355_v4 = vor.u32 %v3862_v61, %v3352_v62 }
  0xe5   :  { %v1386_v48 = vpop.f32.mrf.mxu0 }
  0xe6   :  { %2041 = vmatpush.bf16.msrb.mxu1 %v3335_v17  ;;  %2050 = vmatpush.bf16.msrb.mxu2 %v3431_v11  ;;  %v1387_v22 = vadd.f32 %v1386_v48, %v1374_v14  ;;  %v3880_v11 = vld [vmem:[%s4661_s3 + $0x144] sm:$0xf] }
  0xe8   :  { %2028 = vmatpush.bf16.msrb.mxu3 %v3271_v12  ;;  %v1399_v31 = vpop.f32.mrf.mxu1 }
  0xe9   :  { %v1400_v51 = vadd.f32 %v1399_v31, %v1387_v22  ;;  %v3884_v31 = vld [vmem:[%s4661_s3 + $0x164] sm:$0xf]  ;;  %v3897_v22 = vld [vmem:[%s4661_s3 + $0x1c4] sm:$0xf0] }
  0xea   :  { %2042 = vmatpush.bf16.msrb.mxu1 %v3327_v28  ;;  %v3856_v28 = vld [vmem:[%s4661_s3 + $0x84] sm:$0xf]  ;;  %2051 = vmatpush.bf16.msrb.mxu2 %v3423_v23  ;;  %v3443_v37 = vor.u32 %v3884_v31, %v3440_v58  ;;  %v3512_v31 = vld [vmem:[%s4661_s3 + $0x1f8] sm:$0xf0] }
  0xeb   :  { %v3876_v23 = vld [vmem:[%s4661_s3 + $0x124] sm:$0xf] }
  0xec   :  { %2029 = vmatpush.bf16.msrb.mxu3 %v3263_v24  ;;  %v3275_v24 = vor.u32 %v3842_v15, %v3272_v55  ;;  %v3494_v55 = vld [vmem:[%s4661_s3 + $0x1d0] sm:$0xf] }
  0xed   :  { %v1388_v45 = vpop.f32.mrf.mxu0 }
  0xee   :  { %2087 = vmatpush.bf16.msra.mxu1 %v3387_v33  ;;  %v1412_v8 = vpop.f32.mrf.mxu3  ;;  %2052 = vmatpush.bf16.msrb.mxu2 %v3415_v36  ;;  %v3400_v36 = vld [vmem:[%s4661_s3 + $0x118] sm:$0xf0] }
  0xef   :  { %2030 = vmatmul.bf16.vlgmr.msrb.gmra.mxu3 %v4271_v38  ;;  %v1413_v42 = vadd.f32 %v1412_v8, %v1400_v51  ;;  %v3502_v8 = vld [vmem:[%s4661_s3 + $0x1e0] sm:$0xf] }
  0xf0   :  { %2074 = vmatpush.bf16.msra.mxu3 %v3323_v27  ;;  %v1401_v17 = vpop.f32.mrf.mxu1  ;;  %v3339_v27 = vor.u32 %v3858_v19, %v3336_v5  ;;  %v3503_v9 = vor.u32 %v3901_v63, %v3502_v8  ;;  %v3878_v19 = vld [vmem:[%s4661_s3 + $0x134] sm:$0xf]  ;;  %v3416_v5 = vld [vmem:[%s4661_s3 + $0x138] sm:$0xf0]  ;;  %v3470_v51 = vld [vmem:[%s4661_s3 + $0x1a0] sm:$0xf] }
  0xf1   :  { %v3899_v17 = vld [vmem:[%s4661_s3 + $0x1d4] sm:$0xf0]  ;;  %v3419_v20 = vor.u32 %v3878_v19, %v3416_v5  ;;  %v3496_v8 = vld [vmem:[%s4661_s3 + $0x1d8] sm:$0xf0]  ;;  %v3892_v5 = vld [vmem:[%s4661_s3 + $0x1a4] sm:$0xf] }
  0xf2   :  { %2088 = vmatpush.bf16.msra.mxu1 %v3379_v16  ;;  %v3267_v16 = vor.u32 %v3840_v7, %v3264_v26  ;;  %v3408_v7 = vld [vmem:[%s4661_s3 + $0x128] sm:$0xf0]  ;;  %v3478_v26 = vld [vmem:[%s4661_s3 + $0x1b0] sm:$0xf] }
  0xf3   :  { %v1425_v12 = vpop.f32.mrf.mxu2  ;;  %v3411_v32 = vor.u32 %v3876_v23, %v3408_v7  ;;  %v3464_v23 = vld [vmem:[%s4661_s3 + $0x198] sm:$0xf0] }
  0xf4   :  { %2075 = vmatpush.bf16.msra.mxu3 %v3315_v39  ;;  %v3406_v39 = vld [vmem:[%s4661_s3 + $0x120] sm:$0xf]  ;;  %v1426_v25 = vadd.f32 %v1425_v12, %v1413_v42  ;;  %v3424_v12 = vld [vmem:[%s4661_s3 + $0x148] sm:$0xf0] }
  0xf5   :  { %v3407_v43 = vor.u32 %v3877_v40, %v3406_v39  ;;  %v3427_v15 = vor.u32 %v3880_v11, %v3424_v12  ;;  %v270_v39 = vperm.slane %v4134_v2, 2  ;;  %v3896_v11 = vld [vmem:[%s4661_s3 + $0x1c4] sm:$0xf]  ;;  %v3488_v12 = vld [vmem:[%s4661_s3 + $0x1c8] sm:$0xf0] }
  0xf6   :  { %2089 = vmatpush.bf16.msra.mxu1 %v3371_v46  ;;  %v1414_v33 = vpop.f32.mrf.mxu3  ;;  %v3875_v46 = vld [vmem:[%s4661_s3 + $0x114] sm:$0xf0] }
  0xf7   :  { %2053 = vmatpush.bf16.msrb.mxu2 %v3407_v43  ;;  %v3399_v30 = vor.u32 %v3875_v46, %v3398_v44  ;;  %v3872_v44 = vld [vmem:[%s4661_s3 + $0x104] sm:$0xf]  ;;  %v3392_v46 = vld [vmem:[%s4661_s3 + $0x108] sm:$0xf0] }
  0xf8   :  { %2076 = vmatpush.bf16.msra.mxu3 %v3307_v57  ;;  %v3331_v57 = vor.u32 %v3856_v28, %v3328_v34  ;;  %v3874_v34 = vld [vmem:[%s4661_s3 + $0x114] sm:$0xf] }
  0xfa   :  { %2090 = vmatpush.bf16.msra.mxu1 %v3363_v59  ;;  %v3510_v59 = vld [vmem:[%s4661_s3 + $0x1f0] sm:$0xf] }
  0xfb   :  { %v1427_v41 = vpop.f32.mrf.mxu2  ;;  %2054 = vmatpush.bf16.msrb.mxu2 %v3399_v30  ;;  %v3511_v61 = vor.u32 %v3903_v60, %v3510_v59  ;;  %v3395_v30 = vor.u32 %v3872_v44, %v3392_v46  ;;  %v3900_v60 = vld [vmem:[%s4661_s3 + $0x1e4] sm:$0xf] }
  0xfc   :  { %2077 = vmatpush.bf16.msra.mxu3 %v3299_v53  ;;  %v3391_v53 = vor.u32 %v3873_v50, %v3390_v49  ;;  %v3403_v41 = vor.u32 %v3874_v34, %v3400_v36 }
  0xfd   :  { %2061 = vmatpush.bf16.msrb.mxu0 %v3511_v61  ;;  %v3504_v61 = vld [vmem:[%s4661_s3 + $0x1e8] sm:$0xf0] }
  0xfe   :  { %2091 = vmatpush.bf16.msra.mxu1 %v3355_v4  ;;  %v1438_v35 = vpop.f32.mrf.mxu3  ;;  %v3432_v4 = vld [vmem:[%s4661_s3 + $0x158] sm:$0xf0] }
  0xff   :  { %v1439_v47 = vadd.f32 %v1438_v35, %v1426_v25  ;;  %2055 = vmatpush.bf16.msrb.mxu2 %v3391_v53  ;;  %v3435_v6 = vor.u32 %v3882_v3, %v3432_v4  ;;  %v3462_v35 = vld [vmem:[%s4661_s3 + $0x190] sm:$0xf]  ;;  %v3889_v53 = vld [vmem:[%s4661_s3 + $0x184] sm:$0xf0] }
 0x100   :  { %2078 = vmatpush.bf16.msra.mxu3 %v3291_v0 }
 0x101   :  { %v1625_v48 = vmax.f32 %v1439_v47, 0.0  ;;  %2062 = vmatpush.bf16.msrb.mxu0 %v3503_v9  ;;  %v3891_v47 = vld [vmem:[%s4661_s3 + $0x194] sm:$0xf0] }
 0x102   :  { %2092 = vmatpush.bf16.msra.mxu1 %v3347_v18  ;;  %v3495_v18 = vor.u32 %v3899_v17, %v3494_v55  ;;  %v3894_v17 = vld [vmem:[%s4661_s3 + $0x1b4] sm:$0xf] }
 0x103   :  { %v1629_v52 = vpack.c.bf16 %v1625_v48, %v1625_v48  ;;  %v3463_v48 = vor.u32 %v3891_v47, %v3462_v35 }
 0x104   :  { %2079 = vmatpush.bf16.msra.mxu3 %v3283_v13 }
 0x105   :  { %2043 = vmatmul.bf16.vlgmr.msrb.gmra.mxu1 %v1629_v52  ;;  %v4416_v0 = vpop.f32.mrf.mxu0  ;;  %2063 = vmatpush.bf16.msrb.mxu0 %v3495_v18  ;;  %v3480_v18 = vld [vmem:[%s4661_s3 + $0x1b8] sm:$0xf0] }
 0x106   :  { %2093 = vmatpush.bf16.msra.mxu1 %v3339_v27  ;;  %v1440_v62 = vpop.f32.mrf.mxu3  ;;  %v3895_v27 = vld [vmem:[%s4661_s3 + $0x1b4] sm:$0xf0]  ;;  %v3483_v19 = vor.u32 %v3894_v17, %v3480_v18  ;;  %v3912_v17 = vld [vmem:[%s4663_s5 + $0x40] sm:$0xff] }
 0x107   :  { %v3479_v33 = vor.u32 %v3895_v27, %v3478_v26  ;;  %v3888_v26 = vld [vmem:[%s4661_s3 + $0x184] sm:$0xf]  ;;  %v3456_v27 = vld [vmem:[%s4661_s3 + $0x188] sm:$0xf0] }
 0x108   :  { %2080 = vmatpush.bf16.msra.mxu3 %v3275_v24  ;;  %v1451_v1 = vpop.f32.mrf.mxu1  ;;  %v3487_v24 = vor.u32 %v3897_v22, %v3486_v21  ;;  %v3890_v22 = vld [vmem:[%s4661_s3 + $0x194] sm:$0xf] }
 0x109   :  { %v3467_v7 = vor.u32 %v3890_v22, %v3464_v23 }
 0x10a   :  { %2094 = vmatpush.bf16.msra.mxu1 %v3331_v57  ;;  %2064 = vmatpush.bf16.msrb.mxu0 %v3487_v24  ;;  %v1452_v57 = vadd.f32 %v1451_v1, %v270_v39  ;;  %v271_v24 = vperm.slane %v4134_v2, 3 }
 0x10c   :  { %2081 = vmatpush.bf16.msra.mxu3 %v3267_v16  ;;  %v3893_v16 = vld [vmem:[%s4661_s3 + $0x1a4] sm:$0xf0] }
 0x10d   :  { %v1479_v45 = vpop.f32.mrf.mxu0  ;;  %v3471_v42 = vor.u32 %v3893_v16, %v3470_v51 }
 0x10e   :  { %2065 = vmatpush.bf16.msrb.mxu0 %v3479_v33 }
 0x10f   :  { %2082 = vmatmul.bf16.vlgmr.msra.gmra.mxu3 %v4271_v38  ;;  %v3448_v38 = vld [vmem:[%s4661_s3 + $0x178] sm:$0xf0] }
 0x110   :  { %v3451_v56 = vor.u32 %v3886_v54, %v3448_v38  ;;  %v1453_v14 = vpop.f32.mrf.mxu1  ;;  %v3902_v38 = vld [vmem:[%s4661_s3 + $0x1f4] sm:$0xf] }
 0x111   :  { %v3491_v14 = vor.u32 %v3896_v11, %v3488_v12  ;;  %v3916_v11 = vld [vmem:[%s4663_s5 + $0x60] sm:$0xff] }
 0x112   :  { %2100 = vmatpush.bf16.msra.mxu2 %v3451_v56  ;;  %v1464_v10 = vpop.f32.mrf.mxu3  ;;  %2066 = vmatpush.bf16.msrb.mxu0 %v3471_v42  ;;  %v3515_v56 = vor.u32 %v3902_v38, %v3512_v31 }
 0x113   :  { %v1490_v13 = vpop.f32.mrf.mxu2  ;;  %v1465_v25 = vadd.f32 %v1464_v10, %v1452_v57 }
 0x115   :  { %2095 = vmatmul.bf16.vlgmr.msra.gmra.mxu1 %v1629_v52  ;;  %v1529_v29 = vpop.f32.mrf.mxu0  ;;  %v1478_v50 = vadd.f32 %v4416_v0, %v1465_v25  ;;  %v3454_v52 = vld [vmem:[%s4661_s3 + $0x180] sm:$0xf] }
 0x116   :  { %2101 = vmatpush.bf16.msra.mxu2 %v3443_v37  ;;  %2067 = vmatpush.bf16.msrb.mxu0 %v3463_v48  ;;  %v3455_v54 = vor.u32 %v3889_v53, %v3454_v52  ;;  %v3507_v37 = vor.u32 %v3900_v60, %v3504_v61 }
 0x117   :  { %v1491_v58 = vadd.f32 %v1490_v13, %v1478_v50 }
 0x11a   :  { %2102 = vmatpush.bf16.msra.mxu2 %v3435_v6  ;;  %v1466_v28 = vpop.f32.mrf.mxu3  ;;  %2068 = vmatpush.bf16.msrb.mxu0 %v3455_v54  ;;  %v3898_v6 = vld [vmem:[%s4661_s3 + $0x1d4] sm:$0xf] }
 0x11b   :  { %v1492_v40 = vpop.f32.mrf.mxu2  ;;  %v3499_v9 = vor.u32 %v3898_v6, %v3496_v8  ;;  %v3919_v6 = vld [vmem:[%s4663_s5 + $0x78] sm:$0xff]  ;;  %v3906_v8 = vld [vmem:[%s4663_s5 + $0x10] sm:$0xff] }
 0x11c   :  { %2275 = vmatpush.bf16.msrb.mxu1 %v3919_v6 }
 0x11d   :  { %v1531_v43 = vpop.f32.mrf.mxu0 }
 0x11e   :  { %2103 = vmatpush.bf16.msra.mxu2 %v3427_v15  ;;  %2113 = vmatpush.bf16.msra.mxu0 %v3515_v56 }
 0x122   :  { %2104 = vmatpush.bf16.msra.mxu2 %v3419_v20  ;;  %2114 = vmatpush.bf16.msra.mxu0 %v3507_v37  ;;  %v3472_v20 = vld [vmem:[%s4661_s3 + $0x1a8] sm:$0xf0]  ;;  %v3910_v37 = vld [vmem:[%s4663_s5 + $0x30] sm:$0xff] }
 0x123   :  { %v3475_v21 = vor.u32 %v3892_v5, %v3472_v20  ;;  %v3926_v5 = vld [vmem:[%s4665_s7 + $0x30] sm:$0xff] }
 0x126   :  { %2105 = vmatpush.bf16.msra.mxu2 %v3411_v32  ;;  %v1503_v49 = vpop.f32.mrf.mxu1  ;;  %2115 = vmatpush.bf16.msra.mxu0 %v3499_v9  ;;  %v3459_v32 = vor.u32 %v3888_v26, %v3456_v27  ;;  %v3905_v9 = vld [vmem:[%s4663_s5 + $0x8] sm:$0xff] }
 0x127   :  { %v1504_v62 = vadd.f32 %v1503_v49, %v1491_v58  ;;  %v1696_v49 = vld [vmem:[%s4662_s4] sm:$0x3] }
 0x128   :  { %v1698_v50 = vperm.slane %v1696_v49, 0  ;;  %v1699_v58 = vperm.slane %v1696_v49, 1 }
 0x12a   :  { %2106 = vmatpush.bf16.msra.mxu2 %v3403_v41  ;;  %v1555_v59 = vpop.f32.mrf.mxu0  ;;  %2116 = vmatpush.bf16.msra.mxu0 %v3491_v14  ;;  %v3914_v14 = vld [vmem:[%s4663_s5 + $0x50] sm:$0xff] }
 0x12e   :  { %2107 = vmatpush.bf16.msra.mxu2 %v3395_v30  ;;  %v1505_v0 = vpop.f32.mrf.mxu1  ;;  %2117 = vmatpush.bf16.msra.mxu0 %v3483_v19  ;;  %v3927_v19 = vld [vmem:[%s4665_s7 + $0x38] sm:$0xff] }
 0x132   :  { %v1516_v1 = vpop.f32.mrf.mxu3  ;;  %v1557_v45 = vpop.f32.mrf.mxu0  ;;  %2118 = vmatpush.bf16.msra.mxu0 %v3475_v21  ;;  %v3925_v21 = vld [vmem:[%s4665_s7 + $0x28] sm:$0xff] }
 0x133   :  { %v1517_v3 = vadd.f32 %v1516_v1, %v1504_v62  ;;  %v1542_v4 = vpop.f32.mrf.mxu2  ;;  %v3911_v62 = vld [vmem:[%s4663_s5 + $0x38] sm:$0xff]  ;;  %v3909_v1 = vld [vmem:[%s4663_s5 + $0x28] sm:$0xff]  ;;  %v3904_v45 = vld [vmem:[%s4663_s5] sm:$0xff] }
 0x134   :  { %v1543_v28 = vadd.f32 %v1542_v4, %v271_v24  ;;  %2262 = vmatpush.bf16.msrb.mxu3 %v3911_v62  ;;  %v3907_v4 = vld [vmem:[%s4663_s5 + $0x18] sm:$0xff]  ;;  %v3942_v62 = vld [vmem:[%s4668_s10] ss:$0 sm:$0xff] }
 0x135   :  { %v1530_v63 = vadd.f32 %v1529_v29, %v1517_v3  ;;  %v3908_v3 = vld [vmem:[%s4663_s5 + $0x20] sm:$0xff] }
 0x136   :  { %2119 = vmatpush.bf16.msra.mxu0 %v3467_v7  ;;  %v1556_v33 = vadd.f32 %v1555_v59, %v1543_v28  ;;  %v3924_v7 = vld [vmem:[%s4665_s7 + $0x20] sm:$0xff] }
 0x137   :  { %v1626_v10 = vmax.f32 %v1530_v63, 0.0  ;;  %v3918_v63 = vld [vmem:[%s4663_s5 + $0x70] sm:$0xff] }
 0x138   :  { %2263 = vmatpush.bf16.msrb.mxu3 %v3910_v37  ;;  %2276 = vmatpush.bf16.msrb.mxu1 %v3918_v63 }
 0x139   :  { %v1630_v13 = vpack.c.bf16 %v1626_v10, %v1626_v10  ;;  %v3917_v10 = vld [vmem:[%s4663_s5 + $0x68] sm:$0xff] }
 0x13a   :  { %v1518_v15 = vpop.f32.mrf.mxu3  ;;  %2120 = vmatpush.bf16.msra.mxu0 %v3459_v32 }
 0x13b   :  { %2056 = vmatmul.bf16.vlgmr.msrb.gmra.mxu2 %v1630_v13  ;;  %v1544_v55 = vpop.f32.mrf.mxu2 }
 0x13c   :  { %2264 = vmatpush.bf16.msrb.mxu3 %v3909_v1  ;;  %2277 = vmatpush.bf16.msrb.mxu1 %v3917_v10  ;;  %v3913_v55 = vld [vmem:[%s4663_s5 + $0x48] sm:$0xff] }
 0x13d   :  { %2358 = vmatpush.bf16.msrb.mxu2 %v3927_v19 }
 0x140   :  { %2265 = vmatpush.bf16.msrb.mxu3 %v3908_v3  ;;  %2278 = vmatpush.bf16.msrb.mxu1 %v3916_v11 }
 0x141   :  { %2359 = vmatpush.bf16.msrb.mxu2 %v3926_v5 }
 0x144   :  { %2266 = vmatpush.bf16.msrb.mxu3 %v3907_v4 }
 0x145   :  { %2360 = vmatpush.bf16.msrb.mxu2 %v3925_v21 }
 0x146   :  { %v1568_v29 = vpop.f32.mrf.mxu1 }
 0x147   :  { %v1569_v36 = vadd.f32 %v1568_v29, %v1556_v33 }
 0x148   :  { %2267 = vmatpush.bf16.msrb.mxu3 %v3906_v8 }
 0x149   :  { %2361 = vmatpush.bf16.msrb.mxu2 %v3924_v7 }
 0x14a   :  { %v1607_v34 = vpop.f32.mrf.mxu0 }
 0x14b   :  { %2108 = vmatmul.bf16.vlgmr.msra.gmra.mxu2 %v1630_v13  ;;  %v3915_v13 = vld [vmem:[%s4663_s5 + $0x58] sm:$0xff] }
 0x14c   :  { %2268 = vmatpush.bf16.msrb.mxu3 %v3905_v9  ;;  %2279 = vmatpush.bf16.msrb.mxu1 %v3915_v13 }
 0x14e   :  { %v1570_v2 = vpop.f32.mrf.mxu1 }
 0x150   :  { %2269 = vmatpush.bf16.msrb.mxu3 %v3904_v45  ;;  %2280 = vmatpush.bf16.msrb.mxu1 %v3914_v14 }
 0x152   :  { %v1581_v39 = vpop.f32.mrf.mxu3  ;;  %v1609_v41 = vpop.f32.mrf.mxu0 }
 0x153   :  { %v1582_v40 = vadd.f32 %v1581_v39, %v1569_v36  ;;  %v1594_v51 = vpop.f32.mrf.mxu2  ;;  %v3923_v39 = vld [vmem:[%s4665_s7 + $0x18] sm:$0xff] }
 0x154   :  { %2281 = vmatpush.bf16.msrb.mxu1 %v3913_v55  ;;  %2362 = vmatpush.bf16.msrb.mxu2 %v3923_v39  ;;  %v3935_v41 = vld [vmem:[%s4667_s9 + $0x38] sm:$0xff] }
 0x155   :  { %v1595_v16 = vadd.f32 %v1594_v51, %v1582_v40  ;;  %v3922_v40 = vld [vmem:[%s4665_s7 + $0x10] sm:$0xff]  ;;  %v3921_v51 = vld [vmem:[%s4665_s7 + $0x8] sm:$0xff] }
 0x156   :  { %v1620_v57 = vpop.f32.mrf.mxu1 }
 0x157   :  { %v1608_v42 = vadd.f32 %v1607_v34, %v1595_v16  ;;  %v3920_v16 = vld [vmem:[%s4665_s7] sm:$0xff] }
 0x158   :  { %2282 = vmatpush.bf16.msrb.mxu1 %v3912_v17  ;;  %2363 = vmatpush.bf16.msrb.mxu2 %v3922_v40 }
 0x159   :  { %v1621_v43 = vadd.f32 %v1620_v57, %v1608_v42  ;;  %v3934_v42 = vld [vmem:[%s4667_s9 + $0x30] sm:$0xff]  ;;  %v3933_v57 = vld [vmem:[%s4667_s9 + $0x28] sm:$0xff] }
 0x15a   :  { %v1583_v44 = vpop.f32.mrf.mxu3 }
 0x15b   :  { %v1596_v46 = vpop.f32.mrf.mxu2  ;;  %v1627_v25 = vmax.f32 %v1621_v43, 0.0  ;;  %v3932_v43 = vld [vmem:[%s4667_s9 + $0x20] sm:$0xff] }
 0x15c   :  { %2364 = vmatpush.bf16.msrb.mxu2 %v3921_v51  ;;  %v3931_v46 = vld [vmem:[%s4667_s9 + $0x18] sm:$0xff] }
 0x15d   :  { %v1631_v30 = vpack.c.bf16 %v1627_v25, %v1627_v25  ;;  %v3930_v25 = vld [vmem:[%s4667_s9 + $0x10] sm:$0xff] }
 0x15e   :  { %v1622_v35 = vpop.f32.mrf.mxu1 }
 0x15f   :  { %2069 = vmatmul.bf16.vlgmr.msrb.gmra.mxu0 %v1631_v30 }
 0x160   :  { %2365 = vmatpush.bf16.msrb.mxu2 %v3920_v16  ;;  %2441 = vmatpush.bf16.msrb.mxu0 %v3935_v41 }
 0x164   :  { %2442 = vmatpush.bf16.msrb.mxu0 %v3934_v42 }
 0x168   :  { %2443 = vmatpush.bf16.msrb.mxu0 %v3933_v57 }
 0x16c   :  { %2444 = vmatpush.bf16.msrb.mxu0 %v3932_v43 }
 0x16f   :  { %2121 = vmatmul.bf16.vlgmr.msra.gmra.mxu0 %v1631_v30  ;;  %v3940_v30 = vld [vmem:[%s4664_s6] ss:$0 sm:$0xff] }
 0x170   :  { %2445 = vmatpush.bf16.msrb.mxu0 %v3931_v46 }
 0x172   :  { %v2031_v47 = vpop.f32.mrf.mxu3 }
 0x173   :  { %v2032_v52 = vadd.f32 %v2031_v47, %v1698_v50 }
 0x174   :  { %2446 = vmatpush.bf16.msrb.mxu0 %v3930_v25 }
 0x17a   :  { %v2033_v48 = vpop.f32.mrf.mxu3 }
 0x182   :  { %v2044_v53 = vpop.f32.mrf.mxu1 }
 0x183   :  { %v2045_v38 = vadd.f32 %v2044_v53, %v2032_v52 }
 0x18a   :  { %v2046_v31 = vpop.f32.mrf.mxu1 }
 0x18b   :  { %v3941_v31 = vld [vmem:[%s4666_s8] ss:$0 sm:$0xff] }
 0x192   :  { %v2083_v54 = vpop.f32.mrf.mxu3  ;;  %v2096_v60 = vpop.f32.mrf.mxu1 }
 0x193   :  { %v2084_v59 = vadd.f32 %v2083_v54, %v1699_v58  ;;  %v3929_v54 = vld [vmem:[%s4667_s9 + $0x8] sm:$0xff] }
 0x194   :  { %2447 = vmatpush.bf16.msrb.mxu0 %v3929_v54 }
 0x195   :  { %v2097_v61 = vadd.f32 %v2096_v60, %v2084_v59 }
 0x19a   :  { %v2085_v56 = vpop.f32.mrf.mxu3  ;;  %v2098_v0 = vpop.f32.mrf.mxu1 }
 0x1be   :  { %v2057_v12 = vpop.f32.mrf.mxu2 }
 0x1bf   :  { %v2058_v22 = vadd.f32 %v2057_v12, %v2045_v38  ;;  %v3928_v38 = vld [vmem:[%s4667_s9] sm:$0xff]  ;;  %s2462_s9 = sshll.u32 %s4669_s11, 4  ;;  %s2463_s9 = int_to_ptr.hbm [resolvable:$true] %s2462_s9 }
 0x1c0   :  { %2448 = vmatpush.bf16.msrb.mxu0 %v3928_v38 }
 0x1c6   :  { %v2059_v15 = vpop.f32.mrf.mxu2 }
 0x1ce   :  { %v2109_v18 = vpop.f32.mrf.mxu2 }
 0x1cf   :  { %v2110_v29 = vadd.f32 %v2109_v18, %v2097_v61 }
 0x1d6   :  { %v2111_v20 = vpop.f32.mrf.mxu2 }
 0x1dc   :  { %v2070_v23 = vpop.f32.mrf.mxu0 }
 0x1dd   :  { %v2071_v24 = vadd.f32 %v2070_v23, %v2058_v22 }
 0x1df   :  { %v2126_v26 = vmax.f32 %v2071_v24, 0.0 }
 0x1e1   :  { %v2128_v27 = vpack.c.bf16 %v2126_v26, %v2126_v26 }
 0x1e3   :  { %2270 = vmatmul.bf16.vlgmr.msrb.gmra.mxu3 %v2128_v27 }
 0x1e4   :  { %v2072_v28 = vpop.f32.mrf.mxu0 }
 0x1ec   :  { %v2122_v32 = vpop.f32.mrf.mxu0 }
 0x1ed   :  { %v2123_v33 = vadd.f32 %v2122_v32, %v2110_v29 }
 0x1ef   :  { %v2127_v34 = vmax.f32 %v2123_v33, 0.0 }
 0x1f1   :  { %v2129_v36 = vpack.c.bf16 %v2127_v34, %v2127_v34 }
 0x1f3   :  { %2283 = vmatmul.bf16.vlgmr.msrb.gmra.mxu1 %v2129_v36 }
 0x1f4   :  { %v2124_v2 = vpop.f32.mrf.mxu0 }
 0x266   :  { %v2271_v44 = vpop.f32.mrf.mxu3 }
 0x267   :  { %v2272_v47 = vadd.f32 %v3940_v30, %v2271_v44 }
 0x26e   :  { %v2273_v35 = vpop.f32.mrf.mxu3 }
 0x270   :  { %v2284_v48 = vpop.f32.mrf.mxu1 }
 0x271   :  { %v2285_v49 = vadd.f32 %v2284_v48, %v2272_v47 }
 0x273   :  { %v2288_v50 = vmax.f32 %v2285_v49, 0.0 }
 0x275   :  { %v2289_v52 = vpack.c.bf16 %v2288_v50, %v2288_v50 }
 0x277   :  { %2366 = vmatmul.bf16.vlgmr.msrb.gmra.mxu2 %v2289_v52 }
 0x278   :  { %v2286_v53 = vpop.f32.mrf.mxu1 }
 0x2fa   :  { %v2367_v56 = vpop.f32.mrf.mxu2 }
 0x2fb   :  { %v2368_v58 = vadd.f32 %v3941_v31, %v2367_v56 }
 0x2fd   :  { %v2371_v59 = vmax.f32 %v2368_v58, 0.0 }
 0x2ff   :  { %v2372_v60 = vpack.c.bf16 %v2371_v59, %v2371_v59 }
 0x301   :  { %2449 = vmatmul.bf16.vlgmr.msrb.gmra.mxu0 %v2372_v60 }
 0x302   :  { %v2369_v61 = vpop.f32.mrf.mxu2 }
 0x37e   :  { %v2450_v0 = vpop.f32.mrf.mxu0 }
 0x37f   :  { %v2451_v37 = vadd.f32 %v3942_v62, %v2450_v0 }
 0x381   :  { %2454 = vst [vmem:[#allocation5] sm:$0xff] %v2451_v37 }
 0x382   :  { %2465 = dma.vmem_to_hbm [thread:$0]  %s2461_s28, 128, %s2463_s9, [#allocation4]  }
 0x386   :  { %v2452_v1 = vpop.f32.mrf.mxu0 }
 0x387   :  { %3993 = dma.done.wait [#allocation4], 128  }
 0x388   :  { %3994 = vsyncadd [#allocation4], 4294967168 }
 0x389   :  { %2470 = vsyncpa [#allocation3], 1 }
 0x38a   :  { %2471 = vsyncpa [#allocation4], 1 }

</bundles_post_ra>
